<compile_context>
chip_gen: v5e
topology: v5e:2x2
jax: 0.10.0
libtpu: 0.0.40
codegen_flags: <defaults>
</compile_context>

<pallas_src>
import jax
import jax.numpy as jnp
from jax.experimental import pallas as pl
from jax.experimental.pallas import tpu as pltpu


# ----------------------------- Pallas kernel --------------------------------


def vit_input_kernel(xn_ref, yn_ref, wpx_ref, wpy_ref, bp_ref,
                     woe_ref, wox_ref, bo_ref, x_ref, o_ref):
    # Fourier positional embedding for the L grid positions (batch-invariant).
    # K=2 contraction -> two VPU broadcast FMAs, then EUP sin.  (L, E), f32.
    embed = jnp.sin(
        xn_ref[...] * wpx_ref[...]          # (L,1)*(1,E) -> (L,E)
        + yn_ref[...] * wpy_ref[...]
        + bp_ref[...]
    )
    # Batch-invariant part of the output projection (+ bias).  (L, F), f32.
    pos = jnp.dot(embed, woe_ref[...], preferred_element_type=jnp.float32) + bo_ref[...]

    # Input part of the output projection with the batch folded into M:
    # one (B*L, Fin) @ (Fin, F) MXU pass, f32 accumulation.
    B, L, Fin = x_ref.shape
    F = o_ref.shape[-1]
    x2 = x_ref[...].reshape(B * L, Fin)
    out = jnp.dot(x2, wox_ref[...], preferred_element_type=jnp.float32)

    # Broadcast-add the positional term over the batch and store.
    o_ref[...] = (out.reshape(B, L, F) + pos[None]).astype(o_ref.dtype)


# ------------------------------ JAX wrapper ----------------------------------


def _position_coords(height, width):
    # Mirrors the PyTorch buffers: torch.meshgrid (default 'ij') over
    # (arange(width), arange(height)), flattened row-major, then the
    # FourierEmbedding normalization.  Returns the two coordinate columns
    # separately so the kernel never lane-slices.
    xs = jnp.arange(width, dtype=jnp.float32)
    ys = jnp.arange(height, dtype=jnp.float32)
    xg, yg = jnp.meshgrid(xs, ys, indexing="ij")       # (width, height)
    x_flat = xg.reshape(-1, 1)                          # x_flat[k] = k // height
    y_flat = yg.reshape(-1, 1)                          # y_flat[k] = k %  height
    # Guard the degenerate 1-pixel axis (PyTorch would produce NaN here).
    x_norm = 2.0 * x_flat / max(width - 1, 1) - 1.0
    y_norm = 2.0 * y_flat / max(height - 1, 1) - 1.0
    return x_norm, y_norm                               # each (L, 1), f32


def vit_input(x, params, *, height, width, compute_dtype=None):
    B, L, Fin = x.shape
    assert L == height * width
    wp, bp, wo, bo = params["wp"], params["bp"], params["wo"], params["bo"]
    E = wp.shape[0]
    F = wo.shape[0]
    cdt = x.dtype if compute_dtype is None else compute_dtype

    xn, yn = _position_coords(height, width)            # (L, 1) f32 each

    # Pre-split / pre-transpose weights (no in-kernel .T, no concat).
    wp_x = wp[:, 0].reshape(1, E).astype(jnp.float32)   # multiplies x_norm
    wp_y = wp[:, 1].reshape(1, E).astype(jnp.float32)   # multiplies y_norm
    bp2 = bp.reshape(1, E).astype(jnp.float32)
    woe_t = wo[:, :E].T.astype(jnp.float32)             # (E, F)  embed part (tiny, keep f32)
    wox_t = wo[:, E:].T.astype(cdt)                     # (Fin, F) input part
    bo2 = bo.reshape(1, F).astype(jnp.float32)
    x_c = x.astype(cdt)

    def vmem_spec():
        return pl.BlockSpec(memory_space=pltpu.MemorySpace.VMEM)

    return pl.pallas_call(
        vit_input_kernel,
        out_shape=jax.ShapeDtypeStruct((B, L, F), x.dtype),
        in_specs=[vmem_spec() for _ in range(9)],
        out_specs=vmem_spec(),
    )(xn, yn, wp_x, wp_y, bp2, woe_t, wox_t, bo2, x_c)


# -------------------------- deterministic params -----------------------------


def init_params(key, input_features, embed_features, features):
    k0, k1, k2, k3 = jax.random.split(key, 4)
    cat_features = embed_features + input_features
    return {
        "wp": jax.random.normal(k0, (embed_features, 2), jnp.float32) * (1.0 / 2.0 ** 0.5),
        "bp": jax.random.normal(k1, (embed_features,), jnp.float32) * 0.02,
        "wo": jax.random.normal(k2, (features, cat_features), jnp.float32)
        * (1.0 / cat_features ** 0.5),
        "bo": jax.random.normal(k3, (features,), jnp.float32) * 0.02,
    }


# --------------------------- pure-JAX reference -------------------------------


def vit_input_reference(x, params, *, height, width):
    # Literal transcription of the PyTorch module (independent of the kernel's
    # coordinate helper, so ordering bugs would be caught).
    wp, bp, wo, bo = params["wp"], params["bp"], params["wo"], params["bo"]
    B = x.shape[0]
    xs = jnp.arange(width, dtype=jnp.float32)
    ys = jnp.arange(height, dtype=jnp.float32)
    xg, yg = jnp.meshgrid(xs, ys, indexing="ij")        # torch.meshgrid default
    x_const = xg.reshape(1, -1)
    y_const = yg.reshape(1, -1)
    x_norm = 2.0 * x_const / (width - 1) - 1.0
    y_norm = 2.0 * y_const / (height - 1) - 1.0
    z = jnp.concatenate([x_norm[..., None], y_norm[..., None]], axis=2)   # (1, L, 2)
    embed = jnp.sin(z @ wp.T + bp)                                        # (1, L, E)
    embed = jnp.broadcast_to(embed, (B, *embed.shape[1:]))
    result = jnp.concatenate([embed, x], axis=2)                          # (B, L, E+Fin)
    return result @ wo.T + bo                                             # (B, L, F)


# ----------------------------------- main -------------------------------------


if __name__ == "__main__":
    B = 2
    height, width = 8, 8
    L = height * width
    input_features, embed_features, features = 16, 16, 32

    root = jax.random.PRNGKey(0)
    k_x, k_p = jax.random.split(root)
    x = jax.random.normal(k_x, (B, L, input_features), jnp.float32)
    params = init_params(k_p, input_features, embed_features, features)

    ref = vit_input_reference(x, params, height=height, width=width)

    # f32 path (exact module semantics).
    out = vit_input(x, params, height=height, width=width)
    out = jax.block_until_ready(out)
    assert out.shape == (B, L, features)
    assert jnp.allclose(out, ref, atol=1e-4, rtol=1e-4), "f32 mismatch vs reference"

    # bf16 matmul-operand path (MXU-native inputs, f32 accumulation) — the
    # preferred configuration on v6e/v7x; numerics checked loosely vs f32 ref.
    out_bf16 = vit_input(x, params, height=height, width=width,
                         compute_dtype=jnp.bfloat16)
    out_bf16 = jax.block_until_ready(out_bf16)
    assert jnp.allclose(out_bf16, ref, atol=5e-2, rtol=5e-2), "bf16 mismatch vs reference"

    print("KERNEL_OK")
</pallas_src>

<mosaic_0001>
module attributes {stable_mosaic.version = 11 : i64} {
  func.func @vit_input_kernel(%arg0: memref<64x1xf32, #tpu.memory_space<vmem>>, %arg1: memref<64x1xf32, #tpu.memory_space<vmem>>, %arg2: memref<1x16xf32, #tpu.memory_space<vmem>>, %arg3: memref<1x16xf32, #tpu.memory_space<vmem>>, %arg4: memref<1x16xf32, #tpu.memory_space<vmem>>, %arg5: memref<16x32xf32, #tpu.memory_space<vmem>>, %arg6: memref<16x32xf32, #tpu.memory_space<vmem>>, %arg7: memref<1x32xf32, #tpu.memory_space<vmem>>, %arg8: memref<2x64x16xf32, #tpu.memory_space<vmem>>, %arg9: memref<2x64x32xf32, #tpu.memory_space<vmem>>) attributes {dimension_semantics = [], scalar_prefetch = 0 : i64, scratch_operands = 0 : i64, tpu.core_type = #tpu.core_type<tc>} {
    %c0 = arith.constant 0 : index
    %c0_0 = arith.constant 0 : index
    %0 = vector.load %arg0[%c0, %c0_0] : memref<64x1xf32, #tpu.memory_space<vmem>>, vector<64x1xf32>
    %c0_1 = arith.constant 0 : index
    %c0_2 = arith.constant 0 : index
    %1 = vector.load %arg2[%c0_1, %c0_2] : memref<1x16xf32, #tpu.memory_space<vmem>>, vector<1x16xf32>
    %2 = vector.broadcast %0 : vector<64x1xf32> to vector<64x16xf32>
    %3 = vector.broadcast %1 : vector<1x16xf32> to vector<64x16xf32>
    %4 = arith.mulf %2, %3 : vector<64x16xf32>
    %c0_3 = arith.constant 0 : index
    %c0_4 = arith.constant 0 : index
    %5 = vector.load %arg1[%c0_3, %c0_4] : memref<64x1xf32, #tpu.memory_space<vmem>>, vector<64x1xf32>
    %c0_5 = arith.constant 0 : index
    %c0_6 = arith.constant 0 : index
    %6 = vector.load %arg3[%c0_5, %c0_6] : memref<1x16xf32, #tpu.memory_space<vmem>>, vector<1x16xf32>
    %7 = vector.broadcast %5 : vector<64x1xf32> to vector<64x16xf32>
    %8 = vector.broadcast %6 : vector<1x16xf32> to vector<64x16xf32>
    %9 = arith.mulf %7, %8 : vector<64x16xf32>
    %10 = arith.addf %4, %9 : vector<64x16xf32>
    %c0_7 = arith.constant 0 : index
    %c0_8 = arith.constant 0 : index
    %11 = vector.load %arg4[%c0_7, %c0_8] : memref<1x16xf32, #tpu.memory_space<vmem>>, vector<1x16xf32>
    %12 = vector.broadcast %11 : vector<1x16xf32> to vector<64x16xf32>
    %13 = arith.addf %10, %12 : vector<64x16xf32>
    %14 = math.sin %13 : vector<64x16xf32>
    %c0_9 = arith.constant 0 : index
    %c0_10 = arith.constant 0 : index
    %15 = vector.load %arg5[%c0_9, %c0_10] : memref<16x32xf32, #tpu.memory_space<vmem>>, vector<16x32xf32>
    %cst = arith.constant dense<0.000000e+00> : vector<64x32xf32>
    %16 = tpu.matmul %14, %15, %cst {dimension_numbers = #tpu.dot_dimension_numbers<[1], [0], [0], [1], [0, 0, 1, 1], [], []>} : vector<64x16xf32>, vector<16x32xf32>, vector<64x32xf32> -> vector<64x32xf32>
    %c0_11 = arith.constant 0 : index
    %c0_12 = arith.constant 0 : index
    %17 = vector.load %arg7[%c0_11, %c0_12] : memref<1x32xf32, #tpu.memory_space<vmem>>, vector<1x32xf32>
    %18 = vector.broadcast %17 : vector<1x32xf32> to vector<64x32xf32>
    %19 = arith.addf %16, %18 : vector<64x32xf32>
    %c0_13 = arith.constant 0 : index
    %c0_14 = arith.constant 0 : index
    %c0_15 = arith.constant 0 : index
    %20 = vector.load %arg8[%c0_13, %c0_14, %c0_15] : memref<2x64x16xf32, #tpu.memory_space<vmem>>, vector<2x64x16xf32>
    %21 = vector.shape_cast %20 : vector<2x64x16xf32> to vector<128x16xf32>
    %c0_16 = arith.constant 0 : index
    %c0_17 = arith.constant 0 : index
    %22 = vector.load %arg6[%c0_16, %c0_17] : memref<16x32xf32, #tpu.memory_space<vmem>>, vector<16x32xf32>
    %cst_18 = arith.constant dense<0.000000e+00> : vector<128x32xf32>
    %23 = tpu.matmul %21, %22, %cst_18 {dimension_numbers = #tpu.dot_dimension_numbers<[1], [0], [0], [1], [0, 0, 1, 1], [], []>} : vector<128x16xf32>, vector<16x32xf32>, vector<128x32xf32> -> vector<128x32xf32>
    %24 = vector.shape_cast %23 : vector<128x32xf32> to vector<2x64x32xf32>
    %25 = vector.shape_cast %19 : vector<64x32xf32> to vector<1x64x32xf32>
    %26 = vector.broadcast %25 : vector<1x64x32xf32> to vector<2x64x32xf32>
    %27 = arith.addf %24, %26 : vector<2x64x32xf32>
    %c0_19 = arith.constant 0 : index
    %c0_20 = arith.constant 0 : index
    %c0_21 = arith.constant 0 : index
    %28 = vector.load %arg9[%c0_19, %c0_20, %c0_21] : memref<2x64x32xf32, #tpu.memory_space<vmem>>, vector<2x64x32xf32>
    tpu.vector_store %arg9[%c0_19, %c0_20, %c0_21], %27 {strides = array<i32>} : memref<2x64x32xf32, #tpu.memory_space<vmem>>, vector<2x64x32xf32>,
    return
  }
}

</mosaic_0001>

<bundles_post_ra>
// kernel: tpu_custom_call.1
= control target key start
LH: loop header
LB: loop body
LE: loop exit
PB: predicated region body
PF: predicated region fallthrough
CT: control target
= control target key end

     0   :  { %v1720_v0 = vmov 0   ;;  %vm1418_vm1 = vcmask 130048   ;;  %s3105_s0 = inlined_call_operand.vmem [shape: f32[64,1], index: 0, kind: input, shape index: {}]   ;;  %s3106_s1 = inlined_call_operand.vmem [shape: f32[64,1], index: 1, kind: input, shape index: {}]   ;;  %s3107_s2 = inlined_call_operand.vmem [shape: f32[1,16], index: 2, kind: input, shape index: {}]   ;;  %s3108_s3 = inlined_call_operand.vmem [shape: f32[1,16], index: 3, kind: input, shape index: {}]   ;;  %s3109_s4 = inlined_call_operand.vmem [shape: f32[1,16], index: 4, kind: input, shape index: {}]   ;;  %s3110_s6 = inlined_call_operand.vmem [shape: f32[16,32], index: 6, kind: input, shape index: {}]   ;;  %s3111_s8 = inlined_call_operand.vmem [shape: f32[2,64,16], index: 8, kind: input, shape index: {}]   ;;  %s3112_s5 = inlined_call_operand.vmem [shape: f32[16,32], index: 5, kind: input, shape index: {}]   ;;  %s3113_s7 = inlined_call_operand.vmem [shape: f32[1,32], index: 7, kind: input, shape index: {}]   ;;  %s3114_s9 = inlined_call_operand.vmem [shape: f32[2,64,32], index: 9, kind: output, shape index: {}]  }
   0x1   :  { %1715 = vset.pattern.permute.xlu2 %v1720_v0  ;;  %1714 = vset.pattern.permute.xlu1 %v1720_v0  ;;  %v39_v1 = vld [vmem:[%s3105_s0 + $0x38] sm:$0xff]  ;;  %v38_v2 = vld [vmem:[%s3105_s0 + $0x30] sm:$0xff]  ;;  %v32_v3 = vld [vmem:[%s3105_s0] sm:$0xff] }
   0x2   :  { %1713 = vset.pattern.permute.xlu0 %v1720_v0  ;;  %78 = vperm.xlu2 %1715, %v39_v1   ;;  %v99_v4 = vld [vmem:[%s3106_s1 + $0x38] sm:$0xff]  ;;  %v98_v5 = vld [vmem:[%s3106_s1 + $0x30] sm:$0xff]  ;;  %v92_v6 = vld [vmem:[%s3106_s1] sm:$0xff] }
   0x3   :  { %73 = vperm.xlu0 %1713, %v38_v2   ;;  %43 = vperm.xlu1 %1714, %v32_v3   ;;  %v34_v7 = vld [vmem:[%s3105_s0 + $0x10] sm:$0xff]  ;;  %v33_v8 = vld [vmem:[%s3105_s0 + $0x8] sm:$0xff]  ;;  %v95_v10 = vld [vmem:[%s3106_s1 + $0x18] sm:$0xff] }
   0x4   :  { %v93_v9 = vld [vmem:[%s3106_s1 + $0x8] sm:$0xff]  ;;  %v94_v11 = vld [vmem:[%s3106_s1 + $0x10] sm:$0xff]  ;;  %v35_v12 = vld [vmem:[%s3105_s0 + $0x18] sm:$0xff] }
   0x5   :  { %v37_v13 = vld [vmem:[%s3105_s0 + $0x28] sm:$0xff]  ;;  %v36_v14 = vld [vmem:[%s3105_s0 + $0x20] sm:$0xff] }
   0x6   :  { %v96_v15 = vld [vmem:[%s3106_s1 + $0x20] sm:$0xff]  ;;  %v97_v16 = vld [vmem:[%s3106_s1 + $0x28] sm:$0xff] }
   0x7   :  { %v1831_v18 = vld [vmem:[%s3107_s2] ss:$0 sm:$0xff]  ;;  %v1501_v2 = vld [vmem:[%s3110_s6 + $0x8] sm:$0xff] }
   0x8   :  { %v1836_v19 = vld [vmem:[%s3108_s3] ss:$0 sm:$0xff]  ;;  %1702 = vmatpush.msra.mxu2 %v1501_v2  ;;  %1564 = vmatpush.msra.mxu1 %v1501_v2 }
   0x9   :  { %v1842_v22 = vld [vmem:[%s3109_s4] ss:$0 sm:$0xff] }
   0xa   :  { %138 = vperm.xlu2 %1715, %v99_v4   ;;  %v1500_v3 = vld [vmem:[%s3110_s6] sm:$0xff] }
   0xb   :  { %133 = vperm.xlu0 %1713, %v98_v5   ;;  %103 = vperm.xlu1 %1714, %v92_v6  }
   0xc   :  { %1704 = vmatpush.msra.mxu2 %v1500_v3  ;;  %1565 = vmatpush.msra.mxu1 %v1500_v3 }
  0x12   :  { %53 = vperm.xlu2 %1715, %v34_v7   ;;  %v1490_v7 = vld [vmem:[%s3111_s8 + $0x30] sm:$0xff] }
  0x13   :  { %48 = vperm.xlu0 %1713, %v33_v8   ;;  %108 = vperm.xlu1 %1714, %v93_v9   ;;  %v1413_v8 = vld [vmem:[%s3112_s5 + $0x8] sm:$0xff] }
  0x14   :  { %1457 = vmatpush.msra.mxu0 %v1413_v8  ;;  %1700 = vmatpush.msra.mxu3 %v1413_v8 }
  0x15   :  { %1690 = vmatmul.msk.f32.vlgmr.msra.gmra.mxu2 %vm1418_vm1, %v1490_v7 }
  0x1a   :  { %118 = vperm.xlu2 %1715, %v95_v10   ;;  %v1412_v10 = vld [vmem:[%s3112_s5] sm:$0xff] }
  0x1b   :  { %113 = vperm.xlu0 %1713, %v94_v11   ;;  %58 = vperm.xlu1 %1714, %v35_v12  }
  0x1c   :  { %1458 = vmatpush.msra.mxu0 %v1412_v10  ;;  %1701 = vmatpush.msra.mxu3 %v1412_v10 }
  0x1e   :  { %1703 = vmatpush.msrb.mxu3 %v1501_v2 }
  0x20   :  { %1705 = vmatpush.msrb.mxu3 %v1500_v3 }
  0x22   :  { %68 = vperm.xlu2 %1715, %v37_v13  }
  0x23   :  { %63 = vperm.xlu0 %1713, %v36_v14   ;;  %123 = vperm.xlu1 %1714, %v96_v15  }
  0x2b   :  { %128 = vperm.xlu0 %1713, %v97_v16  }
  0x5c   :  { %v79_v17 = vpop.permute.xlu2 %78 }
  0x5d   :  { %v91_v20 = vmul.f32 %v1831_v18, %v79_v17  ;;  %v1721_v17 = vmov 2475754826  }
  0x64   :  { %v139_v21 = vpop.permute.xlu2 %138 }
  0x65   :  { %v151_v23 = vmul.f32 %v1836_v19, %v139_v21  ;;  %v1722_v21 = vmov 2131351028  }
  0x67   :  { %v159_v24 = vadd.f32 %v151_v23, %v91_v20 }
  0x69   :  { %v1846_v25 = vadd.f32 %v1842_v22, %v159_v24  ;;  %v1723_v24 = vmov 2102212464  }
  0x6b   :  { %v1260_v38 = vand.u32 2139095040, %v1846_v25 }
  0x6c   :  { %v54_v39 = vpop.permute.xlu2 %53 }
  0x6d   :  { %v1261_v46 = vshrl.u32 %v1260_v38, 23  ;;  %v86_v59 = vmul.f32 %v1831_v18, %v54_v39 }
  0x6f   :  { %v1673_v52 = vadd.s32 4294967169, %v1261_v46 }
  0x71   :  { %v1267_v63 = vadd.s32 1, %v1673_v52 }
  0x73   :  { %vm1268_vm2 = vcmp.gt.s32.totalorder %v1267_v63, 0 }
  0x74   :  { %v119_v56 = vpop.permute.xlu2 %118 }
  0x75   :  { %v74_v26 = vpop.permute.xlu0 %73  ;;  %v44_v27 = vpop.permute.xlu1 %43  ;;  %v147_v60 = vmul.f32 %v1836_v19, %v119_v56 }
  0x76   :  { %v90_v30 = vmul.f32 %v1831_v18, %v74_v26  ;;  %v84_v31 = vmul.f32 %v1831_v18, %v44_v27 }
  0x7d   :  { %v134_v28 = vpop.permute.xlu0 %133  ;;  %v104_v29 = vpop.permute.xlu1 %103 }
  0x7e   :  { %v150_v32 = vmul.f32 %v1836_v19, %v134_v28  ;;  %v144_v33 = vmul.f32 %v1836_v19, %v104_v29 }
  0x80   :  { %v158_v34 = vadd.f32 %v150_v32, %v90_v30  ;;  %v152_v35 = vadd.f32 %v144_v33, %v84_v31  ;;  %v1724_v33 = vmov 683565275  }
  0x82   :  { %v1853_v36 = vadd.f32 %v1842_v22, %v158_v34  ;;  %v1856_v37 = vadd.f32 %v1842_v22, %v152_v35 }
  0x84   :  { %v175_v40 = vand.u32 2139095040, %v1856_v37  ;;  %v1105_v49 = vand.u32 2139095040, %v1853_v36  ;;  %v172_v11 = vand.u32 2147483647, %v1856_v37  ;;  %v1102_v27 = vand.u32 2147483647, %v1853_v36 }
  0x85   :  { %v49_v41 = vpop.permute.xlu0 %48  ;;  %v109_v42 = vpop.permute.xlu1 %108 }
  0x86   :  { %v176_v43 = vshrl.u32 %v175_v40, 23  ;;  %v85_v44 = vmul.f32 %v1831_v18, %v49_v41  ;;  %v145_v45 = vmul.f32 %v1836_v19, %v109_v42  ;;  %v1106_v57 = vshrl.u32 %v1105_v49, 23 }
  0x87   :  { %v179_v31 = vand.u32 8388607, %v172_v11  ;;  %v1725_v42 = vmov 920167782  }
  0x88   :  { %v1652_v47 = vadd.s32 4294967169, %v176_v43  ;;  %v153_v48 = vadd.f32 %v145_v45, %v85_v44  ;;  %v1670_v9 = vadd.s32 4294967169, %v1106_v57  ;;  %v1491_v44 = vld [vmem:[%s3111_s8 + $0x38] sm:$0xff] }
  0x89   :  { %1691 = vmatmul.msk.f32.gmra.mxu2 %vm1418_vm1, %v1491_v44 }
  0x8a   :  { %v182_v50 = vadd.s32 1, %v1652_v47  ;;  %v1864_v51 = vadd.f32 %v1842_v22, %v153_v48  ;;  %v1112_v28 = vadd.s32 1, %v1670_v9  ;;  %v1726_v48 = vmov 1326507024  }
  0x8c   :  { %vm183_vm0 = vcmp.gt.s32.totalorder %v182_v50, 0  ;;  %v330_v1 = vand.u32 2139095040, %v1864_v51  ;;  %vm1113_vm3 = vcmp.gt.s32.totalorder %v1112_v28, 0 }
  0x8d   :  { %v184_v53 = vsel %vm183_vm0, %v182_v50, 0  ;;  %v114_v54 = vpop.permute.xlu0 %113  ;;  %v59_v55 = vpop.permute.xlu1 %58  ;;  %v1269_v50 = vsel %vm1268_vm2, %v1267_v63, 0 }
  0x8e   :  { %v1866_v58 = vand.u32 31, %v184_v53  ;;  %v146_v61 = vmul.f32 %v1836_v19, %v114_v54  ;;  %v87_v62 = vmul.f32 %v1831_v18, %v59_v55  ;;  %v331_v14 = vshrl.u32 %v330_v1, 23  ;;  %v69_v54 = vpop.permute.xlu2 %68 }
  0x8f   :  { %v1910_v32 = vshrl.u32 %v184_v53, 5  ;;  %v180_v55 = vor.u32 8388608, %v179_v31  ;;  %v1114_v1 = vsel %vm1113_vm3, %v1112_v28, 0  ;;  %v89_v2 = vmul.f32 %v1831_v18, %v69_v54 }
  0x90   :  { %v1880_v4 = vsub.s32 32, %v1866_v58  ;;  %v154_v5 = vadd.f32 %v146_v61, %v86_v59  ;;  %v155_v6 = vadd.f32 %v147_v60, %v87_v62  ;;  %v189_v34 = vshll.u32 %v1724_v33, %v1866_v58 }
  0x91   :  { %v192_v35 = vshll.u32 %v1721_v17, %v1866_v58  ;;  %v195_v38 = vshll.u32 %v1722_v21, %v1866_v58  ;;  %v1655_v39 = vadd.s32 4294967169, %v331_v14  ;;  %v198_v41 = vshll.u32 %v1723_v24, %v1866_v58 }
  0x92   :  { %v1893_v12 = vadd.f32 %v1842_v22, %v154_v5  ;;  %v1896_v13 = vadd.f32 %v1842_v22, %v155_v6  ;;  %v190_v20 = vshrl.u32 %v1721_v17, %v1880_v4  ;;  %v193_v23 = vshrl.u32 %v1722_v21, %v1880_v4 }
  0x93   :  { %v196_v26 = vshrl.u32 %v1723_v24, %v1880_v4  ;;  %v199_v43 = vshrl.u32 %v1725_v42, %v1880_v4  ;;  %v202_v49 = vshrl.u32 %v1726_v48, %v1880_v4  ;;  %v201_v56 = vshll.u32 %v1725_v42, %v1866_v58 }
  0x94   :  { %v1925_v45 = vor.u32 %v190_v20, %v189_v34  ;;  %v1927_v46 = vor.u32 %v193_v23, %v192_v35  ;;  %vm207_vm4 = vcmp.lt.s32.totalorder %v1910_v32, 4  ;;  %vm204_vm5 = vcmp.lt.s32.totalorder %v1910_v32, 1 }
  0x95   :  { %v64_v15 = vpop.permute.xlu0 %63  ;;  %v124_v16 = vpop.permute.xlu1 %123  ;;  %v197_v47 = vor.u32 %v196_v26, %v195_v38  ;;  %v200_v53 = vor.u32 %v199_v43, %v198_v41  ;;  %vm206_vm6 = vcmp.lt.s32.totalorder %v1910_v32, 3  ;;  %v1109_v59 = vand.u32 8388607, %v1102_v27 }
  0x96   :  { %v88_v29 = vmul.f32 %v1831_v18, %v64_v15  ;;  %v148_v30 = vmul.f32 %v1836_v19, %v124_v16  ;;  %v337_v60 = vadd.s32 1, %v1655_v39  ;;  %v203_v62 = vor.u32 %v202_v49, %v201_v56 }
  0x97   :  { %v213_v57 = vsel %vm207_vm4, %v200_v53, 920167782  ;;  %v212_v58 = vsel %vm204_vm5, %v1925_v45, %v1927_v46  ;;  %v1953_v5 = vshrl.u32 %v1269_v50, 5  ;;  %v1955_v6 = vand.u32 31, %v1269_v50 }
  0x98   :  { %v156_v40 = vadd.f32 %v148_v30, %v88_v29  ;;  %v214_v63 = vsel %vm206_vm6, %v197_v47, %v213_v57  ;;  %vm205_vm7 = vcmp.lt.s32.totalorder %v1910_v32, 2  ;;  %v1958_v7 = vshll.u32 %v180_v55, 8 }
  0x99   :  { %v485_v8 = vand.u32 2139095040, %v1893_v12  ;;  %v215_v10 = vsel %vm205_vm7, %v212_v58, %v214_v63  ;;  %v216_v18 = vsel %vm204_vm5, %v1927_v46, %v197_v47  ;;  %v1966_v14 = vand.u32 31, %v1114_v1 }
  0x9a   :  { %v1933_v52 = vadd.f32 %v1842_v22, %v156_v40  ;;  %vm338_vm8 = vcmp.gt.s32.totalorder %v337_v60, 0  ;;  %v217_v15 = vsel %vm207_vm4, %v203_v62, 1326507024  ;;  %v1110_v16 = vor.u32 8388608, %v1109_v59 }
  0x9b   :  { %v218_v23 = vsel %vm206_vm6, %v200_v53, %v217_v15  ;;  %v245_v26 = vand.u32 65535, %v215_v10  ;;  %v246_v28 = vshrl.u32 %v215_v10, 16  ;;  %v640_v29 = vand.u32 2139095040, %v1896_v13 }
  0x9c   :  { %v219_v30 = vsel %vm205_vm7, %v216_v18, %v218_v23  ;;  %v221_v31 = vand.u32 65535, %v1958_v7  ;;  %v222_v34 = vshrl.u32 %v1958_v7, 16  ;;  %v1983_v35 = vsel %vm338_vm8, %v337_v60, 0 }
  0x9d   :  { %v129_v61 = vpop.permute.xlu0 %128  ;;  %v486_v38 = vshrl.u32 %v485_v8, 23  ;;  %v224_v39 = vshrl.u32 %v219_v30, 16  ;;  %v1987_v40 = vsub.s32 32, %v1955_v6  ;;  %v1989_v41 = vshrl.u32 %v1114_v1, 5 }
  0x9e   :  { %v149_v3 = vmul.f32 %v1836_v19, %v129_v61  ;;  %v1492_v19 = vld [vmem:[%s3111_s8 + $0x40] sm:$0xff]  ;;  %v248_v43 = vmul.u32 %v246_v28, %v221_v31  ;;  %v1991_v44 = vshll.u32 %v1110_v16, 8  ;;  %v1994_v49 = vsub.s32 32, %v1966_v14 }
  0x9f   :  { %1692 = vmatmul.msk.f32.gmra.mxu2 %vm1418_vm1, %v1492_v19  ;;  %v188_v50 = vshrl.u32 %v1724_v33, %v1880_v4  ;;  %v209_v53 = vsel %vm207_vm4, %v197_v47, 2102212464  ;;  %v249_v54 = vmul.u32 %v245_v26, %v222_v34  ;;  %v2001_v55 = vand.u32 31, %v1983_v35 }
  0xa0   :  { %v157_v9 = vadd.f32 %v149_v3, %v89_v2  ;;  %v226_v56 = vmul.u32 %v224_v39, %v221_v31  ;;  %v251_v59 = vshll.u32 %v248_v43, 16  ;;  %v1658_v60 = vadd.s32 4294967169, %v486_v38 }
  0xa1   :  { %v641_v61 = vshrl.u32 %v640_v29, 23  ;;  %v208_v62 = vsel %vm204_vm5, %v188_v50, %v1925_v45  ;;  %v247_v58 = vmul.u32 %v245_v26, %v221_v31  ;;  %v210_v4 = vsel %vm206_vm6, %v1927_v46, %v209_v53 }
  0xa2   :  { %v1974_v20 = vadd.f32 %v1842_v22, %v157_v9  ;;  %v223_v22 = vand.u32 65535, %v219_v30  ;;  %v229_v47 = vshll.u32 %v226_v56, 16  ;;  %v250_v1 = vmul.u32 %v246_v28, %v222_v34 }
  0xa3   :  { %v228_v2 = vmul.u32 %v224_v39, %v222_v34  ;;  %v253_v3 = vshll.u32 %v249_v54, 16  ;;  %vm255_vm9 = vc.u32 %v247_v58, %v251_v59  ;;  %v257_v8 = vadd.s32 %v251_v59, %v247_v58 }
  0xa4   :  { %v227_v57 = vmul.u32 %v223_v22, %v222_v34  ;;  %v225_v63 = vmul.u32 %v223_v22, %v221_v31  ;;  %v256_v18 = vsel %vm255_vm9, 1, %v1720_v0  ;;  %v211_v45 = vsel %vm205_vm7, %v208_v62, %v210_v4 }
  0xa5   :  { %v258_v15 = vadd.s32 %v256_v18, %v250_v1  ;;  %vm259_vm11 = vc.u32 %v257_v8, %v253_v3  ;;  %v252_v16 = vshrl.u32 %v248_v43, 16  ;;  %v230_v26 = vshrl.u32 %v226_v56, 16 }
  0xa6   :  { %v231_v9 = vshll.u32 %v227_v57, 16  ;;  %vm233_vm10 = vc.u32 %v225_v63, %v229_v47  ;;  %v235_v10 = vadd.s32 %v229_v47, %v225_v63  ;;  %v260_v23 = vsel %vm259_vm11, 1, %v1720_v0 }
  0xa7   :  { %v234_v19 = vsel %vm233_vm10, 1, %v1720_v0  ;;  %v232_v28 = vshrl.u32 %v227_v57, 16  ;;  %v254_v30 = vshrl.u32 %v249_v54, 16  ;;  %v262_v34 = vadd.s32 %v260_v23, %v258_v15 }
  0xa8   :  { %v236_v46 = vadd.s32 %v234_v19, %v228_v2  ;;  %vm237_vm12 = vc.u32 %v235_v10, %v231_v9  ;;  %v1119_v32 = vshll.u32 %v1724_v33, %v1966_v14  ;;  %v1120_v38 = vshrl.u32 %v1721_v17, %v1994_v49 }
  0xa9   :  { %v238_v29 = vsel %vm237_vm12, 1, %v1720_v0  ;;  %v1122_v22 = vshll.u32 %v1721_v17, %v1966_v14  ;;  %v1123_v39 = vshrl.u32 %v1722_v21, %v1994_v49  ;;  %v1125_v43 = vshll.u32 %v1722_v21, %v1966_v14 }
  0xaa   :  { %v240_v31 = vadd.s32 %v238_v29, %v236_v46  ;;  %v1126_v50 = vshrl.u32 %v1723_v24, %v1994_v49  ;;  %v2027_v54 = vadd.s32 %v257_v8, %v253_v3  ;;  %v263_v56 = vadd.s32 %v262_v34, %v252_v16 }
  0xab   :  { %v1121_v57 = vor.u32 %v1120_v38, %v1119_v32  ;;  %v1124_v59 = vor.u32 %v1123_v39, %v1122_v22  ;;  %v1128_v58 = vshll.u32 %v1723_v24, %v1966_v14  ;;  %v1129_v4 = vshrl.u32 %v1725_v42, %v1994_v49 }
  0xac   :  { %v241_v53 = vadd.s32 %v240_v31, %v230_v26  ;;  %v1127_v62 = vor.u32 %v1126_v50, %v1125_v43  ;;  %v264_v47 = vadd.s32 %v263_v56, %v254_v30  ;;  %v1131_v1 = vshll.u32 %v1725_v42, %v1966_v14 }
  0xad   :  { %v1132_v2 = vshrl.u32 %v1726_v48, %v1994_v49  ;;  %v492_v3 = vadd.s32 1, %v1658_v60  ;;  %v1661_v8 = vadd.s32 4294967169, %v641_v61  ;;  %v1130_v9 = vor.u32 %v1129_v4, %v1128_v58 }
  0xae   :  { %v2033_v63 = vadd.s32 %v241_v53, %v232_v28  ;;  %vm1134_vm13 = vcmp.lt.s32.totalorder %v1989_v41, 1  ;;  %v268_v10 = vadd.s32 1, %v264_v47  ;;  %vm1137_vm15 = vcmp.lt.s32.totalorder %v1989_v41, 4 }
  0xaf   :  { %v1133_v18 = vor.u32 %v1132_v2, %v1131_v1  ;;  %v265_v19 = vmul.u32 %v1958_v7, %v211_v45  ;;  %vm1136_vm0 = vcmp.lt.s32.totalorder %v1989_v41, 3  ;;  %v1142_v14 = vsel %vm1134_vm13, %v1121_v57, %v1124_v59 }
  0xb0   :  { %vm267_vm14 = vc.u32 %v2033_v63, %v2027_v54  ;;  %v1143_v60 = vsel %vm1137_vm15, %v1130_v9, 920167782  ;;  %vm1135_vm2 = vcmp.lt.s32.totalorder %v1989_v41, 2  ;;  %v1146_v46 = vsel %vm1134_vm13, %v1124_v59, %v1127_v62 }
  0xb1   :  { %v269_v61 = vsel %vm267_vm14, %v268_v10, %v264_v47  ;;  %v1144_v15 = vsel %vm1136_vm0, %v1127_v62, %v1143_v60  ;;  %v647_v16 = vadd.s32 1, %v1661_v8  ;;  %v1147_v45 = vsel %vm1137_vm15, %v1133_v18, 1326507024 }
  0xb2   :  { %v270_v23 = vadd.s32 %v269_v61, %v265_v19  ;;  %v1145_v7 = vsel %vm1135_vm2, %v1142_v14, %v1144_v15  ;;  %v2059_v26 = vshrl.u32 %v1983_v35, 5  ;;  %v2062_v28 = vsub.s32 32, %v2001_v55 }
  0xb3   :  { %v1148_v29 = vsel %vm1136_vm0, %v1130_v9, %v1147_v45  ;;  %v1151_v30 = vand.u32 65535, %v1991_v44  ;;  %v1175_v32 = vand.u32 65535, %v1145_v7  ;;  %v1176_v38 = vshrl.u32 %v1145_v7, 16 }
  0xb4   :  { %v271_v31 = vadd.s32 536870912, %v270_v23  ;;  %v1149_v34 = vsel %vm1135_vm2, %v1146_v46, %v1148_v29  ;;  %vm493_vm3 = vcmp.gt.s32.totalorder %v492_v3, 0  ;;  %v1152_v22 = vshrl.u32 %v1991_v44, 16 }
  0xb5   :  { %v1153_v39 = vand.u32 65535, %v1149_v34  ;;  %v1154_v35 = vshrl.u32 %v1149_v34, 16  ;;  %vm648_vm4 = vcmp.gt.s32.totalorder %v647_v16, 0  ;;  %v795_v43 = vand.u32 2139095040, %v1933_v52 }
  0xb6   :  { %v272_v50 = vshrl.u32 %v271_v31, 30  ;;  %v1178_v53 = vmul.u32 %v1176_v38, %v1151_v30  ;;  %v1118_v56 = vshrl.u32 %v1724_v33, %v1994_v49  ;;  %v1139_v58 = vsel %vm1137_vm15, %v1127_v62, 2102212464 }
  0xb7   :  { %v1156_v4 = vmul.u32 %v1154_v35, %v1151_v30  ;;  %v1157_v47 = vmul.u32 %v1153_v39, %v1152_v22  ;;  %v2075_v1 = vsel %vm493_vm3, %v492_v3, 0  ;;  %v1179_v8 = vmul.u32 %v1175_v32, %v1152_v22 }
  0xb8   :  { %v273_v2 = vshll.u32 %v272_v50, 30  ;;  %v1181_v9 = vshll.u32 %v1178_v53, 16  ;;  %v1138_v10 = vsel %vm1134_vm13, %v1118_v56, %v1121_v57  ;;  %v1155_v18 = vmul.u32 %v1153_v39, %v1151_v30 }
  0xb9   :  { %v1159_v19 = vshll.u32 %v1156_v4, 16  ;;  %v1177_v14 = vmul.u32 %v1175_v32, %v1151_v30  ;;  %v1140_v49 = vsel %vm1136_vm0, %v1124_v59, %v1139_v58  ;;  %v1158_v61 = vmul.u32 %v1154_v35, %v1152_v22 }
  0xba   :  { %v2079_v60 = vsub.s32 %v270_v23, %v273_v2  ;;  %v1180_v62 = vmul.u32 %v1176_v38, %v1152_v22  ;;  %vm174_vm5 = vcmp.lt.s32.totalorder %v1856_v37, 0  ;;  %v1161_v3 = vshll.u32 %v1157_v47, 16 }
  0xbb   :  { %vm1163_vm6 = vc.u32 %v1155_v18, %v1159_v19  ;;  %v1165_v15 = vadd.s32 %v1159_v19, %v1155_v18  ;;  %vm1185_vm7 = vc.u32 %v1177_v14, %v1181_v9  ;;  %v1183_v7 = vshll.u32 %v1179_v8, 16 }
  0xbc   :  { %vm275_vm8 = vcmp.lt.s32.totalorder %v2079_v60, 0  ;;  %v276_v57 = vsub.s32 0, %v2079_v60  ;;  %v1164_v46 = vsel %vm1163_vm6, 1, %v1720_v0  ;;  %v1186_v45 = vsel %vm1185_vm7, 1, %v1720_v0 }
  0xbd   :  { %v1166_v23 = vadd.s32 %v1164_v46, %v1158_v61  ;;  %vm1167_vm9 = vc.u32 %v1165_v15, %v1161_v3  ;;  %v1187_v59 = vadd.s32 %v1181_v9, %v1177_v14  ;;  %v1141_v30 = vsel %vm1135_vm2, %v1138_v10, %v1140_v49 }
  0xbe   :  { %v277_v29 = vsel %vm275_vm8, %v276_v57, %v2079_v60  ;;  %v1168_v31 = vsel %vm1167_vm9, 1, %v1720_v0  ;;  %v1188_v34 = vadd.s32 %v1186_v45, %v1180_v62  ;;  %v1160_v38 = vshrl.u32 %v1156_v4, 16 }
  0xbf   :  { %v278_v32 = vclz %v277_v29  ;;  %v1170_v22 = vadd.s32 %v1168_v31, %v1166_v23  ;;  %vm1189_vm10 = vc.u32 %v1187_v59, %v1183_v7  ;;  %v2093_v39 = vsel %vm648_vm4, %v647_v16, 0 }
  0xc0   :  { %v296_v35 = vsub.s32 4, %v272_v50  ;;  %v1182_v56 = vshrl.u32 %v1178_v53, 16  ;;  %v1190_v58 = vsel %vm1189_vm10, 1, %v1720_v0  ;;  %v1162_v9 = vshrl.u32 %v1157_v47, 16 }
  0xc1   :  { %v1653_v2 = vadd.s32 4294967294, %v278_v32  ;;  %v1171_v18 = vadd.s32 %v1170_v22, %v1160_v38  ;;  %v1192_v19 = vadd.s32 %v1190_v58, %v1188_v34  ;;  %v2096_v41 = vshrl.u32 %v795_v43, 23 }
  0xc2   :  { %v266_v10 = vadd.s32 %v2027_v54, %v2033_v63  ;;  %v1195_v4 = vmul.u32 %v1991_v44, %v1141_v30  ;;  %v3115_v14 = vand.u32 2147483647, %v1864_v51  ;;  %vm2104_vm11 = vcmp.le.f32.partialorder %v172_v11, 0.7853982 }
  0xc3   :  { %vm1654_vm12 = vcmp.lt.s32.totalorder %v1653_v2, 0  ;;  %v2108_v53 = vadd.s32 %v1171_v18, %v1162_v9  ;;  %v1184_v47 = vshrl.u32 %v1179_v8, 16  ;;  %v1193_v49 = vadd.s32 %v1192_v19, %v1182_v56 }
  0xc4   :  { %v281_v43 = vsel %vm1654_vm12, 0, %v1653_v2  ;;  %v297_v61 = vsel %vm174_vm5, %v296_v35, %v272_v50  ;;  %v2112_v54 = vadd.s32 %v1187_v59, %v1183_v7  ;;  %v344_v44 = vshll.u32 %v1724_v33, %v2001_v55 }
  0xc5   :  { %v282_v63 = vsub.s32 32, %v281_v43  ;;  %v286_v62 = vsub.s32 4294967266, %v281_v43  ;;  %v1194_v11 = vadd.s32 %v1193_v49, %v1184_v47  ;;  %v345_v3 = vshrl.u32 %v1721_v17, %v2062_v28 }
  0xc6   :  { %vm1197_vm13 = vc.u32 %v2108_v53, %v2112_v54  ;;  %v334_v8 = vand.u32 8388607, %v3115_v14  ;;  %v347_v50 = vshll.u32 %v1721_v17, %v2001_v55  ;;  %v348_v15 = vshrl.u32 %v1722_v21, %v2062_v28 }
  0xc7   :  { %v283_v57 = vshll.u32 %v2079_v60, %v281_v43  ;;  %v284_v46 = vshrl.u32 %v266_v10, %v282_v63  ;;  %v287_v7 = vadd.s32 127, %v286_v62  ;;  %v1198_v23 = vadd.s32 1, %v1194_v11 }
  0xc8   :  { %v2127_v45 = vor.u32 %v348_v15, %v347_v50  ;;  %v350_v59 = vshll.u32 %v1722_v21, %v2001_v55  ;;  %v351_v29 = vshrl.u32 %v1723_v24, %v2062_v28  ;;  %v354_v30 = vshrl.u32 %v1725_v42, %v2062_v28 }
  0xc9   :  { %v285_v31 = vor.u32 %v284_v46, %v283_v57  ;;  %v288_v34 = vshll.u32 %v287_v7, 23  ;;  %v1199_v32 = vsel %vm1197_vm13, %v1198_v23, %v1194_v11  ;;  %v353_v60 = vshll.u32 %v1723_v24, %v2001_v55 }
  0xca   :  { %v1200_v38 = vadd.s32 %v1199_v32, %v1195_v4  ;;  %v352_v22 = vor.u32 %v351_v29, %v350_v59  ;;  %v356_v35 = vshll.u32 %v1725_v42, %v2001_v55  ;;  %v357_v56 = vshrl.u32 %v1726_v48, %v2062_v28 }
  0xcb   :  { %v2142_v58 = vshrl.u32 %v2075_v1, 5  ;;  %v2145_v2 = vand.u32 31, %v2075_v1  ;;  %v289_v9 = vor.u32 4788187, %v288_v34  ;;  %v355_v18 = vor.u32 %v354_v30, %v353_v60 }
  0xcc   :  { %v299_v19 = vsel %vm2104_vm11, 0, %v297_v61  ;;  %v1201_v10 = vadd.s32 536870912, %v1200_v38  ;;  %v346_v4 = vor.u32 %v345_v3, %v344_v44  ;;  %v358_v47 = vor.u32 %v357_v56, %v356_v35 }
  0xcd   :  { %v290_v49 = vand.u32 2147483647, %v289_v9  ;;  %v292_v43 = vcvt.s32.f32 %v285_v31  ;;  %v335_v55 = vor.u32 8388608, %v334_v8  ;;  %vm359_vm14 = vcmp.lt.s32.totalorder %v2059_v26, 1 }
  0xce   :  { %v2151_v63 = vshrl.u32 %v2093_v39, 5  ;;  %v2153_v62 = vshrl.u32 %v1201_v10, 30  ;;  %vm362_vm15 = vcmp.lt.s32.totalorder %v2059_v26, 4  ;;  %v371_v1 = vsel %vm359_vm14, %v2127_v45, %v352_v22 }
  0xcf   :  { %v293_v61 = vmul.f32 %v292_v43, %v290_v49  ;;  %vm361_vm0 = vcmp.lt.s32.totalorder %v2059_v26, 3  ;;  %v368_v44 = vsel %vm362_vm15, %v355_v18, 920167782  ;;  %v372_v11 = vsel %vm362_vm15, %v358_v47, 1326507024 }
  0xd0   :  { %v316_v3 = vadd.s32 3, %v299_v19  ;;  %v1203_v8 = vshll.u32 %v2153_v62, 30  ;;  %vm360_vm2 = vcmp.lt.s32.totalorder %v2059_v26, 2  ;;  %v373_v50 = vsel %vm361_vm0, %v355_v18, %v372_v11 }
  0xd1   :  { %v294_v15 = vxor.u32 2147483648, %v293_v61  ;;  %v367_v57 = vsel %vm359_vm14, %v346_v4, %v2127_v45  ;;  %v374_v46 = vsel %vm360_vm2, %v371_v1, %v373_v50  ;;  %v2173_v7 = vshll.u32 %v335_v55, 8 }
  0xd2   :  { %v2175_v23 = vsub.s32 %v1200_v38, %v1203_v8  ;;  %v369_v59 = vsel %vm361_vm0, %v352_v22, %v368_v44  ;;  %v378_v29 = vand.u32 65535, %v374_v46  ;;  %v379_v30 = vshrl.u32 %v374_v46, 16 }
  0xd3   :  { %v2180_v31 = vand.u32 31, %v2093_v39  ;;  %v2183_v34 = vadd.s32 4294967169, %v2096_v41  ;;  %v295_v32 = vsel %vm174_vm5, %v294_v15, %v293_v61  ;;  %v376_v60 = vand.u32 65535, %v2173_v7 }
  0xd4   :  { %v2191_v38 = vsel %vm2104_vm11, %v1856_v37, %v295_v32  ;;  %vm1205_vm3 = vcmp.lt.s32.totalorder %v2175_v23, 0  ;;  %v1206_v35 = vsub.s32 0, %v2175_v23  ;;  %v2196_v39 = vshrl.u32 %v2173_v7, 16 }
  0xd5   :  { %v300_v41 = vmul.f32 %v2191_v38, %v2191_v38  ;;  %v2200_v56 = vand.u32 3, %v316_v3  ;;  %v2204_v9 = vsel %vm360_vm2, %v367_v57, %v369_v59  ;;  %v2206_v18 = vmul.u32 %v379_v30, %v376_v60 }
  0xd6   :  { %v1196_v16 = vadd.s32 %v2112_v54, %v2108_v53  ;;  %v1207_v19 = vsel %vm1205_vm3, %v1206_v35, %v2175_v23  ;;  %v343_v10 = vshrl.u32 %v1724_v33, %v2062_v28  ;;  %v2214_v47 = vmul.u32 %v378_v29, %v2196_v39 }
  0xd7   :  { %v301_v49 = vmul.f32 -0.001358992, %v300_v41  ;;  %v308_v43 = vmul.f32 -0.00019511016, %v300_v41  ;;  %v1208_v55 = vclz %v1207_v19  ;;  %v384_v1 = vshll.u32 %v2206_v18, 16 }
  0xd8   :  { %v2219_v61 = vsel %vm359_vm14, %v343_v10, %v346_v4  ;;  %v364_v53 = vsel %vm362_vm15, %v352_v22, 2102212464  ;;  %v380_v54 = vmul.u32 %v378_v29, %v376_v60  ;;  %v401_v44 = vshrl.u32 %v2204_v9, 16 }
  0xd9   :  { %v302_v11 = vadd.f32 0.041655596, %v301_v49  ;;  %v309_v28 = vadd.f32 0.008332121, %v308_v43  ;;  %v1671_v3 = vadd.s32 4294967294, %v1208_v55  ;;  %v400_v8 = vand.u32 65535, %v2204_v9 }
  0xda   :  { %vm1104_vm4 = vcmp.lt.s32.totalorder %v1853_v36, 0  ;;  %v383_v50 = vmul.u32 %v379_v30, %v2196_v39  ;;  %v386_v15 = vshll.u32 %v2214_v47, 16  ;;  %vm388_vm5 = vc.u32 %v380_v54, %v384_v1 }
  0xdb   :  { %v390_v4 = vadd.s32 %v384_v1, %v380_v54  ;;  %v303_v57 = vmul.f32 %v302_v11, %v300_v41  ;;  %v310_v46 = vmul.f32 %v309_v28, %v300_v41  ;;  %vm1672_vm6 = vcmp.lt.s32.totalorder %v1671_v3, 0 }
  0xdc   :  { %v389_v22 = vsel %vm388_vm5, 1, %v1720_v0  ;;  %v1211_v59 = vsel %vm1672_vm6, 0, %v1671_v3  ;;  %v403_v32 = vmul.u32 %v401_v44, %v376_v60  ;;  %vm2231_vm8 = vcmp.le.f32.partialorder %v1102_v27, 0.7853982 }
  0xdd   :  { %v391_v29 = vadd.s32 %v389_v22, %v383_v50  ;;  %vm392_vm7 = vc.u32 %v390_v4, %v386_v15  ;;  %v304_v35 = vadd.f32 -0.4999988, %v303_v57  ;;  %v311_v19 = vadd.f32 -0.16666654, %v310_v46 }
  0xde   :  { %v1212_v30 = vsub.s32 32, %v1211_v59  ;;  %v365_v10 = vsel %vm361_vm0, %v2127_v45, %v364_v53  ;;  %vm319_vm9 = vcmp.eq.s32.totalorder %v2200_v56, 0  ;;  %vm322_vm10 = vcmp.eq.s32.totalorder %v2200_v56, 2 }
  0xdf   :  { %v1216_v49 = vsub.s32 4294967266, %v1211_v59  ;;  %v1226_v43 = vsub.s32 4, %v2153_v62  ;;  %v393_v55 = vsel %vm392_vm7, 1, %v1720_v0  ;;  %v404_v1 = vmul.u32 %v400_v8, %v2196_v39 }
  0xe0   :  { %v305_v27 = vmul.f32 %v304_v35, %v300_v41  ;;  %v312_v54 = vmul.f32 %v311_v19, %v300_v41  ;;  %vm318_vm11 = vcmp.lt.s32.totalorder %v2200_v56, 2  ;;  %v1214_v11 = vshrl.u32 %v1196_v16, %v1212_v30 }
  0xe1   :  { %v402_v28 = vmul.u32 %v400_v8, %v376_v60  ;;  %vm315_vm12 = vweird.f32 %v1856_v37  ;;  %v1213_v45 = vshll.u32 %v2175_v23, %v1211_v59  ;;  %v1217_v53 = vadd.s32 127, %v1216_v49  ;;  %v1484_v23 = vld [vmem:[%s3111_s8] sm:$0xff] }
  0xe2   :  { %v395_v3 = vadd.s32 %v393_v55, %v391_v29  ;;  %v406_v50 = vshll.u32 %v403_v32, 16  ;;  %v306_v15 = vadd.f32 1.0, %v305_v27  ;;  %v313_v4 = vadd.f32 1.0, %v312_v54  ;;  %1684 = vmatmul.msk.f32.vlgmr.msra.gmra.mxu1 %vm1418_vm1, %v1484_v23 }
  0xe3   :  { %v385_v57 = vshrl.u32 %v2206_v18, 16  ;;  %v408_v46 = vshll.u32 %v404_v1, 16  ;;  %v1215_v22 = vor.u32 %v1214_v11, %v1213_v45  ;;  %v1218_v14 = vshll.u32 %v1217_v53, 23  ;;  %v1493_v18 = vld [vmem:[%s3111_s8 + $0x48] sm:$0xff] }
  0xe4   :  { %vm410_vm13 = vc.u32 %v402_v28, %v406_v50  ;;  %v412_v41 = vadd.s32 %v406_v50, %v402_v28  ;;  %v314_v35 = vmul.f32 %v313_v4, %v2191_v38  ;;  %v323_v16 = vxor.u32 2147483648, %v306_v15  ;;  %1693 = vmatmul.msk.f32.gmra.mxu2 %vm1418_vm1, %v1493_v18 }
  0xe5   :  { %v1227_v60 = vsel %vm1104_vm4, %v1226_v43, %v2153_v62  ;;  %v405_v8 = vmul.u32 %v401_v44, %v2196_v39  ;;  %v1219_v59 = vor.u32 4788187, %v1218_v14  ;;  %v396_v38 = vadd.s32 %v395_v3, %v385_v57 }
  0xe6   :  { %v411_v29 = vsel %vm410_vm13, 1, %v1720_v0  ;;  %vm414_vm14 = vc.u32 %v412_v41, %v408_v46  ;;  %v320_v62 = vxor.u32 2147483648, %v314_v35  ;;  %v366_v19 = vsel %vm360_vm2, %v2219_v61, %v365_v10 }
  0xe7   :  { %v413_v30 = vadd.s32 %v411_v29, %v405_v8  ;;  %v415_v49 = vsel %vm414_vm14, 1, %v1720_v0  ;;  %v1220_v43 = vand.u32 2147483647, %v1219_v59  ;;  %v1222_v55 = vcvt.s32.f32 %v1215_v22 }
  0xe8   :  { %v1229_v14 = vsel %vm2231_vm8, 0, %v1227_v60  ;;  %v387_v39 = vshrl.u32 %v2214_v47, 16  ;;  %v321_v44 = vsel %vm319_vm9, %v306_v15, %v320_v62  ;;  %v324_v27 = vsel %vm322_vm10, %v323_v16, %v314_v35 }
  0xe9   :  { %v407_v54 = vshrl.u32 %v403_v32, 16  ;;  %v417_v11 = vadd.s32 %v415_v49, %v413_v30  ;;  %v325_v26 = vsel %vm318_vm11, %v321_v44, %v324_v27  ;;  %v1223_v61 = vmul.f32 %v1222_v55, %v1220_v43 }
  0xea   :  { %v2274_v10 = vadd.s32 %v396_v38, %v387_v39  ;;  %v1257_v28 = vand.u32 2147483647, %v1846_v25  ;;  %v2278_v45 = vsub.s32 32, %v2145_v2  ;;  %v326_v47 = vsel %vm315_vm12, nan, %v325_v26 }
  0xeb   :  { %v409_v53 = vshrl.u32 %v404_v1, 16  ;;  %v418_v3 = vadd.s32 %v417_v11, %v407_v54  ;;  %1676 = vmatmul.msk.f32.vlgmr.msra.gmra.mxu0 %vm1418_vm1, %v326_v47  ;;  %v1224_v32 = vxor.u32 2147483648, %v1223_v61  ;;  %v1246_v50 = vadd.s32 3, %v1229_v14 }
  0xec   :  { %v2283_v15 = vadd.s32 %v412_v41, %v408_v46  ;;  %v420_v56 = vmul.u32 %v2173_v7, %v366_v19  ;;  %v1277_v57 = vshll.u32 %v1721_v17, %v1955_v6  ;;  %v1278_v22 = vshrl.u32 %v1722_v21, %v1987_v40 }
  0xed   :  { %v419_v4 = vadd.s32 %v418_v3, %v409_v53  ;;  %v1280_v37 = vshll.u32 %v1722_v21, %v1955_v6  ;;  %v1225_v1 = vsel %vm1104_vm4, %v1224_v32, %v1223_v61  ;;  %v1264_v46 = vand.u32 8388607, %v1257_v28 }
  0xee   :  { %vm422_vm15 = vc.u32 %v2274_v10, %v2283_v15  ;;  %v1281_v7 = vshrl.u32 %v1723_v24, %v1987_v40  ;;  %v1228_v41 = vsel %vm2231_vm8, %v1853_v36, %v1225_v1  ;;  %v1283_v16 = vshll.u32 %v1723_v24, %v1955_v6 }
  0xef   :  { %v423_v35 = vadd.s32 1, %v419_v4  ;;  %v1284_v60 = vshrl.u32 %v1725_v42, %v1987_v40  ;;  %v1230_v23 = vmul.f32 %v1228_v41, %v1228_v41  ;;  %v1274_v18 = vshll.u32 %v1724_v33, %v1955_v6 }
  0xf0   :  { %v1286_v8 = vshll.u32 %v1725_v42, %v1955_v6  ;;  %v1287_v59 = vshrl.u32 %v1726_v48, %v1987_v40  ;;  %v1275_v9 = vshrl.u32 %v1721_v17, %v1987_v40  ;;  %v2315_v29 = vor.u32 %v1278_v22, %v1277_v57 }
  0xf1   :  { %v424_v38 = vsel %vm422_vm15, %v423_v35, %v419_v4  ;;  %v2317_v62 = vor.u32 %v1281_v7, %v1280_v37  ;;  %v1231_v19 = vmul.f32 -0.001358992, %v1230_v23  ;;  %v1238_v30 = vmul.f32 -0.00019511016, %v1230_v23 }
  0xf2   :  { %v425_v49 = vadd.s32 %v424_v38, %v420_v56  ;;  %v1288_v43 = vor.u32 %v1287_v59, %v1286_v8  ;;  %v1265_v55 = vor.u32 8388608, %v1264_v46  ;;  %v1285_v14 = vor.u32 %v1284_v60, %v1283_v16 }
  0xf3   :  { %vm1289_vm0 = vcmp.lt.s32.totalorder %v1953_v5, 1  ;;  %vm1292_vm2 = vcmp.lt.s32.totalorder %v1953_v5, 4  ;;  %v1232_v6 = vadd.f32 0.041655596, %v1231_v19  ;;  %v1239_v39 = vadd.f32 0.008332121, %v1238_v30 }
  0xf4   :  { %v426_v44 = vadd.s32 536870912, %v425_v49  ;;  %vm1291_vm3 = vcmp.lt.s32.totalorder %v1953_v5, 3  ;;  %v2323_v27 = vsub.s32 32, %v2180_v31  ;;  %v1247_v54 = vand.u32 3, %v1246_v50 }
  0xf5   :  { %vm1290_vm4 = vcmp.lt.s32.totalorder %v1953_v5, 2  ;;  %v1302_v11 = vsel %vm1292_vm2, %v1288_v43, 1326507024  ;;  %v1233_v26 = vmul.f32 %v1232_v6, %v1230_v23  ;;  %v1240_v61 = vmul.f32 %v1239_v39, %v1230_v23 }
  0xf6   :  { %v2328_v47 = vshrl.u32 %v426_v44, 30  ;;  %v1301_v53 = vsel %vm1289_vm0, %v2315_v29, %v2317_v62  ;;  %v2334_v3 = vor.u32 %v1275_v9, %v1274_v18  ;;  %v1298_v32 = vsel %vm1292_vm2, %v1285_v14, 920167782 }
  0xf7   :  { %v1303_v50 = vsel %vm1291_vm3, %v1285_v14, %v1302_v11  ;;  %v2340_v56 = vshll.u32 %v1265_v55, 8  ;;  %v2343_v4 = vadd.s32 1, %v2183_v34  ;;  %v1234_v57 = vadd.f32 -0.4999988, %v1233_v26 }
  0xf8   :  { %v1241_v22 = vadd.f32 -0.16666654, %v1240_v61  ;;  %v428_v37 = vshll.u32 %v2328_v47, 30  ;;  %v950_v1 = vand.u32 2139095040, %v1974_v20  ;;  %v1304_v46 = vsel %vm1290_vm4, %v1301_v53, %v1303_v50 }
  0xf9   :  { %v1306_v7 = vand.u32 65535, %v2340_v56  ;;  %v2351_v35 = vshrl.u32 %v2340_v56, 16  ;;  %v1235_v16 = vmul.f32 %v1234_v57, %v1230_v23  ;;  %vm1248_vm5 = vcmp.lt.s32.totalorder %v1247_v54, 2 }
  0xfa   :  { %v1242_v60 = vmul.f32 %v1241_v22, %v1230_v23  ;;  %v2353_v18 = vsub.s32 %v425_v49, %v428_v37  ;;  %vm1245_vm6 = vweird.f32 %v1853_v36  ;;  %v1297_v34 = vsel %vm1289_vm0, %v2334_v3, %v2315_v29 }
  0xfb   :  { %v1299_v8 = vsel %vm1291_vm3, %v2317_v62, %v1298_v32  ;;  %v1308_v59 = vand.u32 65535, %v1304_v46  ;;  %v1309_v38 = vshrl.u32 %v1304_v46, 16  ;;  %v1236_v9 = vadd.f32 1.0, %v1235_v16 }
  0xfc   :  { %v1243_v19 = vadd.f32 1.0, %v1242_v60  ;;  %vm430_vm7 = vcmp.lt.s32.totalorder %v2353_v18, 0  ;;  %v431_v23 = vsub.s32 0, %v2353_v18  ;;  %vm1249_vm8 = vcmp.eq.s32.totalorder %v1247_v54, 0 }
  0xfd   :  { %vm1252_vm9 = vcmp.eq.s32.totalorder %v1247_v54, 2  ;;  %v1311_v30 = vmul.u32 %v1309_v38, %v1306_v7  ;;  %v2366_v49 = vmul.u32 %v1308_v59, %v2351_v35  ;;  %v1253_v55 = vxor.u32 2147483648, %v1236_v9 }
  0xfe   :  { %v1244_v43 = vmul.f32 %v1243_v19, %v1228_v41  ;;  %v432_v14 = vsel %vm430_vm7, %v431_v23, %v2353_v18  ;;  %v1310_v6 = vmul.u32 %v1308_v59, %v1306_v7  ;;  %vm329_vm10 = vcmp.lt.s32.totalorder %v1864_v51, 0 }
  0xff   :  { %v421_v39 = vadd.s32 %v2283_v15, %v2274_v10  ;;  %v433_v44 = vclz %v432_v14  ;;  %v1300_v11 = vsel %vm1290_vm4, %v1297_v34, %v1299_v8  ;;  %v1314_v26 = vshll.u32 %v1311_v30, 16 }
 0x100   :  { %v1250_v61 = vxor.u32 2147483648, %v1244_v43  ;;  %v1273_v53 = vshrl.u32 %v1724_v33, %v1987_v40  ;;  %v1313_v41 = vmul.u32 %v1309_v38, %v2351_v35  ;;  %v1316_v32 = vshll.u32 %v2366_v49, 16 }
 0x101   :  { %vm803_vm11 = vcmp.gt.s32.totalorder %v2343_v4, 0  ;;  %v1254_v50 = vsel %vm1252_vm9, %v1253_v55, %v1244_v43  ;;  %v1656_v57 = vadd.s32 4294967294, %v433_v44  ;;  %v1294_v10 = vsel %vm1292_vm2, %v2317_v62, 2102212464 }
 0x102   :  { %v1330_v15 = vand.u32 65535, %v1300_v11  ;;  %v1251_v22 = vsel %vm1249_vm8, %v1236_v9, %v1250_v61  ;;  %v3120_v37 = vand.u32 2147483647, %v1864_v51  ;;  %vm1318_vm13 = vc.u32 %v1310_v6, %v1314_v26 }
 0x103   :  { %v1320_v46 = vadd.s32 %v1314_v26, %v1310_v6  ;;  %v1331_v16 = vshrl.u32 %v1300_v11, 16  ;;  %v1255_v60 = vsel %vm1248_vm5, %v1251_v22, %v1254_v50  ;;  %vm1657_vm14 = vcmp.lt.s32.totalorder %v1656_v57, 0 }
 0x104   :  { %vm2386_vm12 = vcmp.le.f32.partialorder %v3120_v37, 0.7853982  ;;  %v451_v34 = vsub.s32 4, %v2328_v47  ;;  %v1319_v8 = vsel %vm1318_vm13, 1, %v1720_v0  ;;  %v1256_v62 = vsel %vm1245_vm6, nan, %v1255_v60 }
 0x105   :  { %v436_v59 = vsel %vm1657_vm14, 0, %v1656_v57  ;;  %v1321_v38 = vadd.s32 %v1319_v8, %v1313_v41  ;;  %vm1322_vm15 = vc.u32 %v1320_v46, %v1316_v32  ;;  %1682 = vmatmul.msk.f32.vlgmr.msra.gmra.mxu3 %vm1418_vm1, %v1256_v62  ;;  %v1315_v23 = vshrl.u32 %v1311_v30, 16 }
 0x106   :  { %v437_v9 = vsub.s32 32, %v436_v59  ;;  %v441_v19 = vsub.s32 4294967266, %v436_v59  ;;  %v1323_v43 = vsel %vm1322_vm15, 1, %v1720_v0  ;;  %v1332_v55 = vmul.u32 %v1330_v15, %v1306_v7 }
 0x107   :  { %v1325_v54 = vadd.s32 %v1323_v43, %v1321_v38  ;;  %v1333_v14 = vmul.u32 %v1331_v16, %v1306_v7  ;;  %v1334_v6 = vmul.u32 %v1330_v15, %v2351_v35  ;;  %v438_v44 = vshll.u32 %v2353_v18, %v436_v59 }
 0x108   :  { %v439_v11 = vshrl.u32 %v421_v39, %v437_v9  ;;  %v442_v36 = vadd.s32 127, %v441_v19  ;;  %v482_v26 = vand.u32 2147483647, %v1893_v12  ;;  %v452_v61 = vsel %vm329_vm10, %v451_v34, %v2328_v47 }
 0x109   :  { %v1335_v41 = vmul.u32 %v1331_v16, %v2351_v35  ;;  %v1336_v30 = vshll.u32 %v1333_v14, 16  ;;  %v1338_v32 = vshll.u32 %v1334_v6, 16  ;;  %v1293_v7 = vsel %vm1289_vm0, %v1273_v53, %v2334_v3 }
 0x10a   :  { %v440_v50 = vor.u32 %v439_v11, %v438_v44  ;;  %v443_v57 = vshll.u32 %v442_v36, 23  ;;  %v1295_v18 = vsel %vm1291_vm3, %v2315_v29, %v1294_v10  ;;  %v1317_v39 = vshrl.u32 %v2366_v49, 16 }
 0x10b   :  { %v1326_v15 = vadd.s32 %v1325_v54, %v1315_v23  ;;  %vm1340_vm2 = vc.u32 %v1332_v55, %v1336_v30  ;;  %v1342_v22 = vadd.s32 %v1336_v30, %v1332_v55  ;;  %v454_v35 = vsel %vm2386_vm12, 0, %v452_v61 }
 0x10c   :  { %v444_v47 = vor.u32 4788187, %v443_v57  ;;  %v1341_v37 = vsel %vm1340_vm2, 1, %v1720_v0  ;;  %v489_v46 = vand.u32 8388607, %v482_v26  ;;  %v804_v3 = vsel %vm803_vm11, %v2343_v4, 0 }
 0x10d   :  { %v1337_v53 = vshrl.u32 %v1333_v14, 16  ;;  %v1343_v29 = vadd.s32 %v1341_v37, %v1335_v41  ;;  %vm1344_vm0 = vc.u32 %v1342_v22, %v1338_v32  ;;  %v447_v10 = vcvt.s32.f32 %v440_v50 }
 0x10e   :  { %v445_v49 = vand.u32 2147483647, %v444_v47  ;;  %v1296_v16 = vsel %vm1290_vm4, %v1293_v7, %v1295_v18  ;;  %v1345_v60 = vsel %vm1344_vm0, 1, %v1720_v0  ;;  %v471_v34 = vadd.s32 3, %v454_v35 }
 0x10f   :  { %v2422_v8 = vadd.s32 %v1326_v15, %v1317_v39  ;;  %v1339_v62 = vshrl.u32 %v1334_v6, 16  ;;  %v1347_v59 = vadd.s32 %v1345_v60, %v1343_v29  ;;  %v2424_v9 = vadd.s32 %v1342_v22, %v1338_v32 }
 0x110   :  { %v448_v38 = vmul.f32 %v447_v10, %v445_v49  ;;  %v490_v19 = vor.u32 8388608, %v489_v46  ;;  %v503_v4 = vshrl.u32 %v1722_v21, %v2278_v45  ;;  %v499_v43 = vshll.u32 %v1724_v33, %v2145_v2 }
 0x111   :  { %v1348_v23 = vadd.s32 %v1347_v59, %v1337_v53  ;;  %v500_v5 = vshrl.u32 %v1721_v17, %v2278_v45  ;;  %v506_v54 = vshrl.u32 %v1723_v24, %v2278_v45  ;;  %v502_v14 = vshll.u32 %v1721_v17, %v2145_v2 }
 0x112   :  { %v449_v55 = vxor.u32 2147483648, %v448_v38  ;;  %v508_v6 = vshll.u32 %v1723_v24, %v2145_v2  ;;  %v509_v44 = vshrl.u32 %v1725_v42, %v2278_v45  ;;  %v505_v36 = vshll.u32 %v1722_v21, %v2145_v2 }
 0x113   :  { %v1349_v11 = vadd.s32 %v1348_v23, %v1339_v62  ;;  %v511_v61 = vshll.u32 %v1725_v42, %v2145_v2  ;;  %v512_v41 = vshrl.u32 %v1726_v48, %v2278_v45  ;;  %vm1352_vm3 = vc.u32 %v2422_v8, %v2424_v9 }
 0x114   :  { %v450_v30 = vsel %vm329_vm10, %v449_v55, %v448_v38  ;;  %v2450_v32 = vor.u32 %v503_v4, %v502_v14  ;;  %v510_v50 = vor.u32 %v509_v44, %v508_v6  ;;  %v2457_v18 = vor.u32 %v506_v54, %v505_v36 }
 0x115   :  { %v2455_v57 = vsel %vm2386_vm12, %v1864_v51, %v450_v30  ;;  %v1353_v7 = vadd.s32 1, %v1349_v11  ;;  %v513_v2 = vor.u32 %v512_v41, %v511_v61  ;;  %v2459_v39 = vshrl.u32 %v804_v3, 5 }
 0x116   :  { %v2461_v15 = vand.u32 31, %v804_v3  ;;  %v455_v22 = vmul.f32 %v2455_v57, %v2455_v57  ;;  %v1350_v47 = vmul.u32 %v2340_v56, %v1296_v16  ;;  %v2466_v37 = vor.u32 %v500_v5, %v499_v43 }
 0x117   :  { %v1354_v35 = vsel %vm1352_vm3, %v1353_v7, %v1349_v11  ;;  %vm514_vm4 = vcmp.lt.s32.totalorder %v2142_v58, 1  ;;  %vm517_vm5 = vcmp.lt.s32.totalorder %v2142_v58, 4  ;;  %v2472_v3 = vand.u32 3, %v471_v34 }
 0x118   :  { %v456_v40 = vmul.f32 -0.001358992, %v455_v22  ;;  %v463_v46 = vmul.f32 -0.00019511016, %v455_v22  ;;  %v1355_v53 = vadd.s32 %v1354_v35, %v1350_v47  ;;  %v523_v29 = vsel %vm517_vm5, %v510_v50, 920167782 }
 0x119   :  { %v526_v56 = vsel %vm514_vm4, %v2450_v32, %v2457_v18  ;;  %v527_v49 = vsel %vm517_vm5, %v513_v2, 1326507024  ;;  %v2480_v10 = vshll.u32 %v490_v19, 8  ;;  %vm516_vm6 = vcmp.lt.s32.totalorder %v2142_v58, 3 }
 0x11a   :  { %v457_v16 = vadd.f32 0.041655596, %v456_v40  ;;  %v464_v60 = vadd.f32 0.008332121, %v463_v46  ;;  %v1356_v62 = vadd.s32 536870912, %v1355_v53  ;;  %vm515_vm7 = vcmp.lt.s32.totalorder %v2142_v58, 2 }
 0x11b   :  { %v522_v34 = vsel %vm514_vm4, %v2466_v37, %v2450_v32  ;;  %v524_v59 = vsel %vm516_vm6, %v2457_v18, %v523_v29  ;;  %v528_v38 = vsel %vm516_vm6, %v510_v50, %v527_v49  ;;  %v531_v5 = vand.u32 65535, %v2480_v10 }
 0x11c   :  { %v458_v19 = vmul.f32 %v457_v16, %v455_v22  ;;  %v465_v4 = vmul.f32 %v464_v60, %v455_v22  ;;  %v2493_v23 = vshrl.u32 %v1356_v62, 30  ;;  %v529_v43 = vsel %vm515_vm7, %v526_v56, %v528_v38 }
 0x11d   :  { %v2499_v54 = vshrl.u32 %v2480_v10, 16  ;;  %v533_v55 = vand.u32 65535, %v529_v43  ;;  %v534_v14 = vshrl.u32 %v529_v43, 16  ;;  %v525_v36 = vsel %vm515_vm7, %v522_v34, %v524_v59 }
 0x11e   :  { %v459_v6 = vadd.f32 -0.4999988, %v458_v19  ;;  %v466_v44 = vadd.f32 -0.16666654, %v465_v4  ;;  %v1358_v11 = vshll.u32 %v2493_v23, 30  ;;  %vm474_vm8 = vcmp.eq.s32.totalorder %v2472_v3, 0 }
 0x11f   :  { %vm477_vm9 = vcmp.eq.s32.totalorder %v2472_v3, 2  ;;  %v536_v61 = vmul.u32 %v534_v14, %v531_v5  ;;  %v537_v41 = vmul.u32 %v533_v55, %v2499_v54  ;;  %vm473_vm10 = vcmp.lt.s32.totalorder %v2472_v3, 2 }
 0x120   :  { %v460_v30 = vmul.f32 %v459_v6, %v455_v22  ;;  %v467_v50 = vmul.f32 %v466_v44, %v455_v22  ;;  %v2508_v7 = vsub.s32 %v1355_v53, %v1358_v11  ;;  %v498_v2 = vshrl.u32 %v1724_v33, %v2278_v45 }
 0x121   :  { %vm470_vm11 = vweird.f32 %v1864_v51  ;;  %v535_v47 = vmul.u32 %v533_v55, %v531_v5  ;;  %v539_v35 = vshll.u32 %v536_v61, 16  ;;  %v555_v40 = vand.u32 65535, %v525_v36 }
 0x122   :  { %v556_v46 = vshrl.u32 %v525_v36, 16  ;;  %v461_v29 = vadd.f32 1.0, %v460_v30  ;;  %v468_v56 = vadd.f32 1.0, %v467_v50  ;;  %vm1259_vm12 = vcmp.lt.s32.totalorder %v1846_v25, 0 }
 0x123   :  { %vm1360_vm13 = vcmp.lt.s32.totalorder %v2508_v7, 0  ;;  %v1361_v22 = vsub.s32 0, %v2508_v7  ;;  %v538_v53 = vmul.u32 %v534_v14, %v2499_v54  ;;  %v541_v49 = vshll.u32 %v537_v41, 16 }
 0x124   :  { %vm543_vm14 = vc.u32 %v535_v47, %v539_v35  ;;  %v545_v16 = vadd.s32 %v539_v35, %v535_v47  ;;  %v469_v45 = vmul.f32 %v468_v56, %v2455_v57  ;;  %v478_v60 = vxor.u32 2147483648, %v461_v29 }
 0x125   :  { %v1362_v62 = vsel %vm1360_vm13, %v1361_v22, %v2508_v7  ;;  %v544_v34 = vsel %vm543_vm14, 1, %v1720_v0  ;;  %v1351_v59 = vadd.s32 %v2424_v9, %v2422_v8  ;;  %v519_v43 = vsel %vm517_vm5, %v2457_v18, 2102212464 }
 0x126   :  { %v1363_v38 = vclz %v1362_v62  ;;  %v546_v19 = vadd.s32 %v544_v34, %v538_v53  ;;  %vm547_vm15 = vc.u32 %v545_v16, %v541_v49  ;;  %v475_v4 = vxor.u32 2147483648, %v469_v45  ;;  %v1485_v34 = vld [vmem:[%s3111_s8 + $0x8] sm:$0xff] }
 0x127   :  { %v548_v55 = vsel %vm547_vm15, 1, %v1720_v0  ;;  %v558_v14 = vmul.u32 %v556_v46, %v531_v5  ;;  %v1381_v6 = vsub.s32 4, %v2493_v23  ;;  %v518_v44 = vsel %vm514_vm4, %v498_v2, %v2466_v37  ;;  %1685 = vmatmul.msk.f32.gmra.mxu1 %vm1418_vm1, %v1485_v34 }
 0x128   :  { %v1674_v57 = vadd.s32 4294967294, %v1363_v38  ;;  %v540_v11 = vshrl.u32 %v536_v61, 16  ;;  %v476_v8 = vsel %vm474_vm8, %v461_v29, %v475_v4  ;;  %v479_v9 = vsel %vm477_vm9, %v478_v60, %v469_v45 }
 0x129   :  { %v550_v36 = vadd.s32 %v548_v55, %v546_v19  ;;  %v559_v18 = vmul.u32 %v555_v40, %v2499_v54  ;;  %v480_v30 = vsel %vm473_vm10, %v476_v8, %v479_v9  ;;  %v520_v50 = vsel %vm516_vm6, %v2450_v32, %v519_v43 }
 0x12a   :  { %vm1675_vm2 = vcmp.lt.s32.totalorder %v1674_v57, 0  ;;  %v561_v47 = vshll.u32 %v558_v14, 16  ;;  %v481_v37 = vsel %vm470_vm11, nan, %v480_v30  ;;  %v557_v35 = vmul.u32 %v555_v40, %v531_v5 }
 0x12b   :  { %v1366_v61 = vsel %vm1675_vm2, 0, %v1674_v57  ;;  %v551_v2 = vadd.s32 %v550_v36, %v540_v11  ;;  %1677 = vmatmul.msk.f32.gmra.mxu0 %vm1418_vm1, %v481_v37  ;;  %v1382_v3 = vsel %vm1259_vm12, %v1381_v6, %v2493_v23  ;;  %v542_v22 = vshrl.u32 %v537_v41, 16 }
 0x12c   :  { %v1367_v29 = vsub.s32 32, %v1366_v61  ;;  %v1371_v56 = vsub.s32 4294967266, %v1366_v61  ;;  %v560_v53 = vmul.u32 %v556_v46, %v2499_v54  ;;  %v563_v49 = vshll.u32 %v559_v18, 16 }
 0x12d   :  { %vm565_vm0 = vc.u32 %v557_v35, %v561_v47  ;;  %v567_v32 = vadd.s32 %v561_v47, %v557_v35  ;;  %v1368_v51 = vshll.u32 %v2508_v7, %v1366_v61  ;;  %v2549_v40 = vadd.s32 %v551_v2, %v542_v22 }
 0x12e   :  { %v1369_v16 = vshrl.u32 %v1351_v59, %v1367_v29  ;;  %v1372_v45 = vadd.s32 127, %v1371_v56  ;;  %v566_v5 = vsel %vm565_vm0, 1, %v1720_v0  ;;  %v637_v62 = vand.u32 2147483647, %v1896_v13  ;;  %v1494_v59 = vld [vmem:[%s3111_s8 + $0x50] sm:$0xff] }
 0x12f   :  { %v568_v60 = vadd.s32 %v566_v5, %v560_v53  ;;  %vm569_vm3 = vc.u32 %v567_v32, %v563_v49  ;;  %v951_v23 = vshrl.u32 %v950_v1, 23  ;;  %vm2557_vm4 = vcmp.le.f32.partialorder %v1257_v28, 0.7853982  ;;  %1694 = vmatmul.msk.f32.gmra.mxu2 %vm1418_vm1, %v1494_v59 }
 0x130   :  { %v1370_v41 = vor.u32 %v1369_v16, %v1368_v51  ;;  %v1373_v54 = vshll.u32 %v1372_v45, 23  ;;  %v570_v46 = vsel %vm569_vm3, 1, %v1720_v0  ;;  %v562_v38 = vshrl.u32 %v558_v14, 16 }
 0x131   :  { %v2567_v1 = vadd.s32 %v567_v32, %v563_v49  ;;  %v572_v19 = vadd.s32 %v570_v46, %v568_v60  ;;  %v1384_v43 = vsel %vm2557_vm4, 0, %v1382_v3  ;;  %v521_v28 = vsel %vm515_vm7, %v518_v44, %v520_v50 }
 0x132   :  { %v1374_v4 = vor.u32 4788187, %v1373_v54  ;;  %v564_v55 = vshrl.u32 %v559_v18, 16  ;;  %v1377_v57 = vcvt.s32.f32 %v1370_v41  ;;  %v644_v14 = vand.u32 8388607, %v637_v62 }
 0x133   :  { %v573_v6 = vadd.s32 %v572_v19, %v562_v38  ;;  %vm577_vm5 = vc.u32 %v2549_v40, %v2567_v1  ;;  %v657_v8 = vshll.u32 %v1721_v17, %v2180_v31  ;;  %v658_v9 = vshrl.u32 %v1722_v21, %v2323_v27 }
 0x134   :  { %v1375_v11 = vand.u32 2147483647, %v1374_v4  ;;  %v661_v58 = vshrl.u32 %v1723_v24, %v2323_v27  ;;  %v655_v36 = vshrl.u32 %v1721_v17, %v2323_v27  ;;  %v660_v18 = vshll.u32 %v1722_v21, %v2180_v31 }
 0x135   :  { %v574_v44 = vadd.s32 %v573_v6, %v564_v55  ;;  %v664_v30 = vshrl.u32 %v1725_v42, %v2323_v27  ;;  %v654_v47 = vshll.u32 %v1724_v33, %v2180_v31  ;;  %v2593_v37 = vor.u32 %v658_v9, %v657_v8 }
 0x136   :  { %v1378_v50 = vmul.f32 %v1377_v57, %v1375_v11  ;;  %v663_v61 = vshll.u32 %v1723_v24, %v2180_v31  ;;  %v2597_v35 = vor.u32 %v661_v58, %v660_v18  ;;  %v666_v29 = vshll.u32 %v1725_v42, %v2180_v31 }
 0x137   :  { %v578_v2 = vadd.s32 1, %v574_v44  ;;  %v667_v56 = vshrl.u32 %v1726_v48, %v2323_v27  ;;  %v1667_v3 = vadd.s32 4294967169, %v951_v23  ;;  %v575_v53 = vmul.u32 %v2480_v10, %v521_v28 }
 0x138   :  { %v1379_v22 = vxor.u32 2147483648, %v1378_v50  ;;  %v645_v49 = vor.u32 8388608, %v644_v14  ;;  %v2607_v51 = vor.u32 %v655_v36, %v654_v47  ;;  %v665_v16 = vor.u32 %v664_v30, %v663_v61 }
 0x139   :  { %v579_v32 = vsel %vm577_vm5, %v578_v2, %v574_v44  ;;  %v668_v45 = vor.u32 %v667_v56, %v666_v29  ;;  %v1401_v31 = vadd.s32 3, %v1384_v43  ;;  %vm669_vm6 = vcmp.lt.s32.totalorder %v2151_v63, 1 }
 0x13a   :  { %v1380_v5 = vsel %vm1259_vm12, %v1379_v22, %v1378_v50  ;;  %v580_v60 = vadd.s32 %v579_v32, %v575_v53  ;;  %vm670_vm7 = vcmp.lt.s32.totalorder %v2151_v63, 2  ;;  %vm672_vm8 = vcmp.lt.s32.totalorder %v2151_v63, 4 }
 0x13b   :  { %v2615_v10 = vsel %vm2557_vm4, %v1846_v25, %v1380_v5  ;;  %v681_v23 = vsel %vm669_vm6, %v2593_v37, %v2597_v35  ;;  %vm671_vm9 = vcmp.lt.s32.totalorder %v2151_v63, 3  ;;  %v682_v46 = vsel %vm672_vm8, %v668_v45, 1326507024 }
 0x13c   :  { %v1385_v41 = vmul.f32 %v2615_v10, %v2615_v10  ;;  %v581_v54 = vadd.s32 536870912, %v580_v60  ;;  %v677_v7 = vsel %vm669_vm6, %v2607_v51, %v2593_v37  ;;  %v678_v34 = vsel %vm672_vm8, %v665_v16, 920167782 }
 0x13d   :  { %v683_v59 = vsel %vm671_vm9, %v665_v16, %v682_v46  ;;  %v2636_v38 = vshll.u32 %v645_v49, 8  ;;  %v679_v58 = vsel %vm671_vm9, %v2597_v35, %v678_v34  ;;  %v2649_v44 = vadd.s32 1, %v1667_v3 }
 0x13e   :  { %v1386_v19 = vmul.f32 -0.001358992, %v1385_v41  ;;  %v1393_v4 = vmul.f32 -0.00019511016, %v1385_v41  ;;  %v582_v43 = vshrl.u32 %v581_v54, 30  ;;  %v684_v28 = vsel %vm670_vm7, %v681_v23, %v683_v59 }
 0x13f   :  { %v2641_v55 = vand.u32 65535, %v2636_v38  ;;  %v2644_v57 = vshrl.u32 %v2636_v38, 16  ;;  %v688_v6 = vand.u32 65535, %v684_v28  ;;  %v689_v14 = vshrl.u32 %v684_v28, 16 }
 0x140   :  { %v1387_v11 = vadd.f32 0.041655596, %v1386_v19  ;;  %v1394_v8 = vadd.f32 0.008332121, %v1393_v4  ;;  %v583_v9 = vshll.u32 %v582_v43, 30  ;;  %v1402_v36 = vand.u32 3, %v1401_v31 }
 0x141   :  { %v2652_v18 = vmul.u32 %v689_v14, %v2641_v55  ;;  %v2655_v30 = vmul.u32 %v688_v6, %v2644_v57  ;;  %vm2659_vm10 = vcmp.le.f32.partialorder %v482_v26, 0.7853982  ;;  %vm484_vm11 = vcmp.lt.s32.totalorder %v1893_v12, 0 }
 0x142   :  { %v1388_v50 = vmul.f32 %v1387_v11, %v1385_v41  ;;  %v1395_v47 = vmul.f32 %v1394_v8, %v1385_v41  ;;  %v584_v2 = vsub.s32 %v580_v60, %v583_v9  ;;  %v606_v29 = vsub.s32 4, %v582_v43 }
 0x143   :  { %v680_v56 = vsel %vm670_vm7, %v677_v7, %v679_v58  ;;  %v690_v3 = vmul.u32 %v688_v6, %v2641_v55  ;;  %v694_v22 = vshll.u32 %v2652_v18, 16  ;;  %vm1404_vm13 = vcmp.eq.s32.totalorder %v1402_v36, 0 }
 0x144   :  { %v1389_v53 = vadd.f32 -0.4999988, %v1388_v50  ;;  %v1396_v49 = vadd.f32 -0.16666654, %v1395_v47  ;;  %vm585_vm12 = vcmp.lt.s32.totalorder %v584_v2, 0  ;;  %v586_v32 = vsub.s32 0, %v584_v2 }
 0x145   :  { %v693_v26 = vmul.u32 %v689_v14, %v2644_v57  ;;  %v696_v16 = vshll.u32 %v2655_v30, 16  ;;  %vm698_vm14 = vc.u32 %v690_v3, %v694_v22  ;;  %v700_v45 = vadd.s32 %v694_v22, %v690_v3 }
 0x146   :  { %v1390_v5 = vmul.f32 %v1389_v53, %v1385_v41  ;;  %v1397_v31 = vmul.f32 %v1396_v49, %v1385_v41  ;;  %vm1403_vm15 = vcmp.lt.s32.totalorder %v1402_v36, 2  ;;  %v587_v60 = vsel %vm585_vm12, %v586_v32, %v584_v2 }
 0x147   :  { %v699_v23 = vsel %vm698_vm14, 1, %v1720_v0  ;;  %vm1400_vm2 = vweird.f32 %v1846_v25  ;;  %v588_v54 = vclz %v587_v60  ;;  %v607_v46 = vsel %vm484_vm11, %v606_v29, %v582_v43  ;;  %v1495_v25 = vld [vmem:[%s3111_s8 + $0x58] sm:$0xff] }
 0x148   :  { %v674_v7 = vsel %vm672_vm8, %v2597_v35, 2102212464  ;;  %vm702_vm0 = vc.u32 %v700_v45, %v696_v16  ;;  %v1391_v34 = vadd.f32 1.0, %v1390_v5  ;;  %v1398_v59 = vadd.f32 1.0, %v1397_v31  ;;  %1695 = vmatmul.msk.f32.gmra.mxu2 %vm1418_vm1, %v1495_v25 }
 0x149   :  { %v701_v19 = vadd.s32 %v699_v23, %v693_v26  ;;  %v710_v4 = vand.u32 65535, %v680_v56  ;;  %vm1407_vm3 = vcmp.eq.s32.totalorder %v1402_v36, 2  ;;  %v1659_v41 = vadd.s32 4294967294, %v588_v54  ;;  %v1486_v36 = vld [vmem:[%s3111_s8 + $0x10] sm:$0xff] }
 0x14a   :  { %v653_v28 = vshrl.u32 %v1724_v33, %v2323_v27  ;;  %v703_v6 = vsel %vm702_vm0, 1, %v1720_v0  ;;  %v1399_v14 = vmul.f32 %v1398_v59, %v2615_v10  ;;  %v1408_v11 = vxor.u32 2147483648, %v1391_v34  ;;  %1686 = vmatmul.msk.f32.gmra.mxu1 %vm1418_vm1, %v1486_v36 }
 0x14b   :  { %v576_v43 = vadd.s32 %v2567_v1, %v2549_v40  ;;  %v711_v8 = vshrl.u32 %v680_v56, 16  ;;  %vm1660_vm4 = vcmp.lt.s32.totalorder %v1659_v41, 0  ;;  %v609_v35 = vsel %vm2659_vm10, 0, %v607_v46 }
 0x14c   :  { %v673_v9 = vsel %vm669_vm6, %v653_v28, %v2607_v51  ;;  %v675_v27 = vsel %vm671_vm9, %v2593_v37, %v674_v7  ;;  %v1405_v58 = vxor.u32 2147483648, %v1399_v14  ;;  %v591_v50 = vsel %vm1660_vm4, 0, %v1659_v41 }
 0x14d   :  { %v705_v10 = vadd.s32 %v703_v6, %v701_v19  ;;  %v714_v47 = vmul.u32 %v710_v4, %v2644_v57  ;;  %v592_v29 = vsub.s32 32, %v591_v50  ;;  %v596_v40 = vsub.s32 4294967266, %v591_v50 }
 0x14e   :  { %v695_v1 = vshrl.u32 %v2652_v18, 16  ;;  %v713_v56 = vmul.u32 %v711_v8, %v2641_v55  ;;  %v1406_v3 = vsel %vm1404_vm13, %v1391_v34, %v1405_v58  ;;  %v1409_v22 = vsel %vm1407_vm3, %v1408_v11, %v1399_v14  ;;  %v1496_v14 = vld [vmem:[%s3111_s8 + $0x60] sm:$0xff] }
 0x14f   :  { %v593_v51 = vshll.u32 %v584_v2, %v591_v50  ;;  %v712_v53 = vmul.u32 %v710_v4, %v2641_v55  ;;  %v1410_v37 = vsel %vm1403_vm15, %v1406_v3, %v1409_v22  ;;  %v594_v49 = vshrl.u32 %v576_v43, %v592_v29 }
 0x150   :  { %v597_v32 = vadd.s32 127, %v596_v40  ;;  %v716_v26 = vshll.u32 %v713_v56, 16  ;;  %v1411_v16 = vsel %vm1400_vm2, nan, %v1410_v37  ;;  %v706_v45 = vadd.s32 %v705_v10, %v695_v1 }
 0x151   :  { %v715_v18 = vmul.u32 %v711_v8, %v2644_v57  ;;  %v718_v5 = vshll.u32 %v714_v47, 16  ;;  %1683 = vmatmul.msk.f32.gmra.mxu3 %vm1418_vm1, %v1411_v16  ;;  %v595_v31 = vor.u32 %v594_v49, %v593_v51  ;;  %v2703_v55 = vsub.s32 32, %v2461_v15 }
 0x152   :  { %v598_v60 = vshll.u32 %v597_v32, 23  ;;  %vm720_vm5 = vc.u32 %v712_v53, %v716_v26  ;;  %v722_v2 = vadd.s32 %v716_v26, %v712_v53  ;;  %v676_v57 = vsel %vm670_vm7, %v673_v9, %v675_v27 }
 0x153   :  { %v697_v23 = vshrl.u32 %v2655_v30, 16  ;;  %v721_v54 = vsel %vm720_vm5, 1, %v1720_v0  ;;  %vm958_vm6 = vcmp.gt.s32.totalorder %v2649_v44, 0  ;;  %v792_v34 = vand.u32 2147483647, %v1933_v52 }
 0x154   :  { %v599_v46 = vor.u32 4788187, %v598_v60  ;;  %v723_v7 = vadd.s32 %v721_v54, %v715_v18  ;;  %vm724_vm8 = vc.u32 %v722_v2, %v718_v5  ;;  %v626_v59 = vadd.s32 3, %v609_v35 }
 0x155   :  { %v2719_v19 = vadd.s32 %v706_v45, %v697_v23  ;;  %v717_v63 = vshrl.u32 %v713_v56, 16  ;;  %v725_v4 = vsel %vm724_vm8, 1, %v1720_v0  ;;  %v602_v41 = vcvt.s32.f32 %v595_v31 }
 0x156   :  { %v600_v30 = vand.u32 2147483647, %v599_v46  ;;  %v719_v28 = vshrl.u32 %v714_v47, 16  ;;  %v727_v6 = vadd.s32 %v725_v4, %v723_v7  ;;  %v2725_v11 = vadd.s32 %v722_v2, %v718_v5 }
 0x157   :  { %v809_v43 = vshll.u32 %v1724_v33, %v2461_v15  ;;  %v810_v8 = vshrl.u32 %v1721_v17, %v2703_v55  ;;  %v813_v35 = vshrl.u32 %v1722_v21, %v2703_v55  ;;  %v799_v58 = vand.u32 8388607, %v792_v34 }
 0x158   :  { %v603_v9 = vmul.f32 %v602_v41, %v600_v30  ;;  %v728_v27 = vadd.s32 %v727_v6, %v717_v63  ;;  %v812_v50 = vshll.u32 %v1721_v17, %v2461_v15  ;;  %vm732_vm7 = vc.u32 %v2719_v19, %v2725_v11 }
 0x159   :  { %v816_v10 = vshrl.u32 %v1723_v24, %v2703_v55  ;;  %v818_v47 = vshll.u32 %v1723_v24, %v2461_v15  ;;  %v819_v29 = vshrl.u32 %v1725_v42, %v2703_v55  ;;  %1696 = vmatmul.msk.f32.vlgmr.msrb.gmra.mxu3 %vm1418_vm1, %v1496_v14  ;;  %v815_v56 = vshll.u32 %v1722_v21, %v2461_v15 }
 0x15a   :  { %v604_v40 = vxor.u32 2147483648, %v603_v9  ;;  %v729_v1 = vadd.s32 %v728_v27, %v719_v28  ;;  %v822_v3 = vshrl.u32 %v1726_v48, %v2703_v55  ;;  %v811_v22 = vor.u32 %v810_v8, %v809_v43 }
 0x15b   :  { %v814_v51 = vor.u32 %v813_v35, %v812_v50  ;;  %v820_v53 = vor.u32 %v819_v29, %v818_v47  ;;  %v821_v37 = vshll.u32 %v1725_v42, %v2461_v15  ;;  %v730_v32 = vmul.u32 %v2636_v38, %v676_v57 }
 0x15c   :  { %v605_v49 = vsel %vm484_vm11, %v604_v40, %v603_v9  ;;  %v733_v26 = vadd.s32 1, %v729_v1  ;;  %v817_v16 = vor.u32 %v816_v10, %v815_v56  ;;  %v800_v18 = vor.u32 8388608, %v799_v58 }
 0x15d   :  { %v608_v45 = vsel %vm2659_vm10, %v1893_v12, %v605_v49  ;;  %v823_v5 = vor.u32 %v822_v3, %v821_v37  ;;  %vm827_vm9 = vcmp.lt.s32.totalorder %v2459_v39, 4  ;;  %vm824_vm12 = vcmp.lt.s32.totalorder %v2459_v39, 1 }
 0x15e   :  { %v610_v31 = vmul.f32 %v608_v45, %v608_v45  ;;  %v734_v15 = vsel %vm732_vm7, %v733_v26, %v729_v1  ;;  %v833_v38 = vsel %vm827_vm9, %v820_v53, 920167782  ;;  %v2768_v60 = vsel %vm958_vm6, %v2649_v44, 0 }
 0x15f   :  { %v735_v61 = vadd.s32 %v734_v15, %v730_v32  ;;  %vm826_vm10 = vcmp.lt.s32.totalorder %v2459_v39, 3  ;;  %v832_v2 = vsel %vm824_vm12, %v811_v22, %v814_v51  ;;  %v836_v23 = vsel %vm824_vm12, %v814_v51, %v817_v16 }
 0x160   :  { %v611_v36 = vmul.f32 -0.001358992, %v610_v31  ;;  %v618_v25 = vmul.f32 -0.00019511016, %v610_v31  ;;  %v834_v57 = vsel %vm826_vm10, %v817_v16, %v833_v38  ;;  %v2777_v54 = vand.u32 3, %v626_v59 }
 0x161   :  { %v736_v46 = vadd.s32 536870912, %v735_v61  ;;  %v837_v44 = vsel %vm827_vm9, %v823_v5, 1326507024  ;;  %v2781_v7 = vshll.u32 %v800_v18, 8  ;;  %vm825_vm11 = vcmp.lt.s32.totalorder %v2459_v39, 2 }
 0x162   :  { %v612_v63 = vadd.f32 0.041655596, %v611_v36  ;;  %v619_v4 = vadd.f32 0.008332121, %v618_v25  ;;  %v838_v30 = vsel %vm826_vm10, %v820_v53, %v837_v44  ;;  %v2790_v28 = vsel %vm825_vm11, %v832_v2, %v834_v57 }
 0x163   :  { %v2786_v41 = vshrl.u32 %v736_v46, 30  ;;  %v839_v59 = vsel %vm825_vm11, %v836_v23, %v838_v30  ;;  %v841_v6 = vand.u32 65535, %v2781_v7  ;;  %v808_v27 = vshrl.u32 %v1724_v33, %v2703_v55 }
 0x164   :  { %v613_v14 = vmul.f32 %v612_v63, %v610_v31  ;;  %v620_v43 = vmul.f32 %v619_v4, %v610_v31  ;;  %v843_v8 = vand.u32 65535, %v839_v59  ;;  %v844_v35 = vshrl.u32 %v839_v59, 16 }
 0x165   :  { %v738_v9 = vshll.u32 %v2786_v41, 30  ;;  %v829_v58 = vsel %vm827_vm9, %v817_v16, 2102212464  ;;  %v842_v50 = vshrl.u32 %v2781_v7, 16  ;;  %v866_v40 = vshrl.u32 %v2790_v28, 16 }
 0x166   :  { %v614_v10 = vadd.f32 -0.4999988, %v613_v14  ;;  %v621_v47 = vadd.f32 -0.16666654, %v620_v43  ;;  %v846_v29 = vmul.u32 %v844_v35, %v841_v6  ;;  %v2803_v1 = vand.u32 31, %v2768_v60 }
 0x167   :  { %v2805_v56 = vsub.s32 %v735_v61, %v738_v9  ;;  %v828_v3 = vsel %vm824_vm12, %v808_v27, %v811_v22  ;;  %v847_v53 = vmul.u32 %v843_v8, %v842_v50  ;;  %vm628_vm13 = vcmp.lt.s32.totalorder %v2777_v54, 2 }
 0x168   :  { %v615_v55 = vmul.f32 %v614_v10, %v610_v31  ;;  %v622_v37 = vmul.f32 %v621_v47, %v610_v31  ;;  %v830_v49 = vsel %vm826_vm10, %v814_v51, %v829_v58  ;;  %v849_v32 = vshll.u32 %v846_v29, 16 }
 0x169   :  { %vm625_vm14 = vweird.f32 %v1893_v12  ;;  %vm740_vm15 = vcmp.lt.s32.totalorder %v2805_v56, 0  ;;  %v741_v26 = vsub.s32 0, %v2805_v56  ;;  %v845_v16 = vmul.u32 %v843_v8, %v841_v6 }
 0x16a   :  { %v865_v18 = vand.u32 65535, %v2790_v28  ;;  %v616_v5 = vadd.f32 1.0, %v615_v55  ;;  %v623_v22 = vadd.f32 1.0, %v622_v37  ;;  %v848_v15 = vmul.u32 %v844_v35, %v842_v50 }
 0x16b   :  { %v2816_v38 = vmul.u32 %v866_v40, %v841_v6  ;;  %v742_v31 = vsel %vm740_vm15, %v741_v26, %v2805_v56  ;;  %v851_v61 = vshll.u32 %v847_v53, 16  ;;  %vm853_vm2 = vc.u32 %v845_v16, %v849_v32 }
 0x16c   :  { %v855_v51 = vadd.s32 %v849_v32, %v845_v16  ;;  %v624_v2 = vmul.f32 %v623_v22, %v608_v45  ;;  %v633_v36 = vxor.u32 2147483648, %v616_v5  ;;  %v743_v25 = vclz %v742_v31 }
 0x16d   :  { %v854_v57 = vsel %vm853_vm2, 1, %v1720_v0  ;;  %vm629_vm0 = vcmp.eq.s32.totalorder %v2777_v54, 0  ;;  %vm632_vm3 = vcmp.eq.s32.totalorder %v2777_v54, 2  ;;  %v731_v23 = vadd.s32 %v2725_v11, %v2719_v19 }
 0x16e   :  { %v856_v46 = vadd.s32 %v854_v57, %v848_v15  ;;  %v630_v44 = vxor.u32 2147483648, %v624_v2  ;;  %v1662_v63 = vadd.s32 4294967294, %v743_v25  ;;  %v2826_v4 = vsel %vm825_vm11, %v828_v3, %v830_v49 }
 0x16f   :  { %vm857_vm4 = vc.u32 %v855_v51, %v851_v61  ;;  %v867_v30 = vmul.u32 %v865_v18, %v841_v6  ;;  %v869_v28 = vmul.u32 %v865_v18, %v842_v50  ;;  %v871_v59 = vshll.u32 %v2816_v38, 16  ;;  %v1497_v18 = vld [vmem:[%s3111_s8 + $0x68] sm:$0xff] }
 0x170   :  { %v858_v45 = vsel %vm857_vm4, 1, %v1720_v0  ;;  %v631_v14 = vsel %vm629_vm0, %v616_v5, %v630_v44  ;;  %v634_v43 = vsel %vm632_vm3, %v633_v36, %v624_v2  ;;  %vm1663_vm5 = vcmp.lt.s32.totalorder %v1662_v63, 0  ;;  %v1487_v5 = vld [vmem:[%s3111_s8 + $0x18] sm:$0xff]  ;;  %1697 = vmatmul.msk.f32.gmra.mxu3 %vm1418_vm1, %v1497_v18 }
 0x171   :  { %v860_v8 = vadd.s32 %v858_v45, %v856_v46  ;;  %v635_v19 = vsel %vm628_vm13, %v631_v14, %v634_v43  ;;  %v746_v11 = vsel %vm1663_vm5, 0, %v1662_v63  ;;  %v850_v35 = vshrl.u32 %v846_v29, 16  ;;  %1687 = vmatmul.msk.f32.gmra.mxu1 %vm1418_vm1, %v1487_v5 }
 0x172   :  { %v852_v9 = vshrl.u32 %v847_v53, 16  ;;  %v636_v39 = vsel %vm625_vm14, nan, %v635_v19  ;;  %v747_v27 = vsub.s32 32, %v746_v11  ;;  %v751_v58 = vsub.s32 4294967266, %v746_v11 }
 0x173   :  { %v870_v10 = vmul.u32 %v866_v40, %v842_v50  ;;  %1678 = vmatmul.msk.f32.gmra.mxu0 %vm1418_vm1, %v636_v39  ;;  %v861_v6 = vadd.s32 %v860_v8, %v850_v35  ;;  %v873_v47 = vshll.u32 %v869_v28, 16  ;;  %vm875_vm6 = vc.u32 %v867_v30, %v871_v59 }
 0x174   :  { %v877_v3 = vadd.s32 %v871_v59, %v867_v30  ;;  %v748_v55 = vshll.u32 %v2805_v56, %v746_v11  ;;  %v749_v37 = vshrl.u32 %v731_v23, %v747_v27  ;;  %v752_v54 = vadd.s32 127, %v751_v58 }
 0x175   :  { %v876_v49 = vsel %vm875_vm6, 1, %v1720_v0  ;;  %v761_v29 = vsub.s32 4, %v2786_v41  ;;  %v2838_v53 = vadd.s32 %v861_v6, %v852_v9  ;;  %v947_v26 = vand.u32 2147483647, %v1974_v20 }
 0x176   :  { %v878_v12 = vadd.s32 %v876_v49, %v870_v10  ;;  %vm879_vm8 = vc.u32 %v877_v3, %v873_v47  ;;  %v750_v32 = vor.u32 %v749_v37, %v748_v55  ;;  %v753_v50 = vshll.u32 %v752_v54, 23 }
 0x177   :  { %v880_v40 = vsel %vm879_vm8, 1, %v1720_v0  ;;  %v2843_v16 = vshrl.u32 %v2768_v60, 5  ;;  %v2846_v56 = vsub.s32 32, %v2803_v1  ;;  %v872_v22 = vshrl.u32 %v2816_v38, 16 }
 0x178   :  { %v882_v15 = vadd.s32 %v880_v40, %v878_v12  ;;  %vm2857_vm7 = vcmp.le.f32.partialorder %v637_v62, 0.7853982  ;;  %vm639_vm9 = vcmp.lt.s32.totalorder %v1896_v13, 0  ;;  %v754_v60 = vor.u32 4788187, %v753_v50 }
 0x179   :  { %v2864_v61 = vadd.s32 %v877_v3, %v873_v47  ;;  %v762_v38 = vsel %vm639_vm9, %v761_v29, %v2786_v41  ;;  %v874_v51 = vshrl.u32 %v869_v28, 16  ;;  %v885_v62 = vmul.u32 %v2781_v7, %v2826_v4 }
 0x17a   :  { %v883_v2 = vadd.s32 %v882_v15, %v872_v22  ;;  %v755_v36 = vand.u32 2147483647, %v754_v60  ;;  %v757_v25 = vcvt.s32.f32 %v750_v32  ;;  %v954_v57 = vand.u32 8388607, %v947_v26 }
 0x17b   :  { %vm887_vm12 = vc.u32 %v2838_v53, %v2864_v61  ;;  %v965_v46 = vshrl.u32 %v1721_v17, %v2846_v56  ;;  %v968_v41 = vshrl.u32 %v1722_v21, %v2846_v56  ;;  %v971_v44 = vshrl.u32 %v1723_v24, %v2846_v56 }
 0x17c   :  { %v884_v23 = vadd.s32 %v883_v2, %v874_v51  ;;  %v758_v63 = vmul.f32 %v757_v25, %v755_v36  ;;  %v967_v7 = vshll.u32 %v1721_v17, %v2803_v1  ;;  %v973_v4 = vshll.u32 %v1723_v24, %v2803_v1 }
 0x17d   :  { %v974_v45 = vshrl.u32 %v1725_v42, %v2846_v56  ;;  %v970_v28 = vshll.u32 %v1722_v21, %v2803_v1  ;;  %v976_v59 = vshll.u32 %v1725_v42, %v2803_v1  ;;  %v977_v14 = vshrl.u32 %v1726_v48, %v2846_v56 }
 0x17e   :  { %v888_v30 = vadd.s32 1, %v884_v23  ;;  %v759_v43 = vxor.u32 2147483648, %v758_v63  ;;  %v955_v8 = vor.u32 8388608, %v954_v57  ;;  %v964_v17 = vshll.u32 %v1724_v33, %v2803_v1 }
 0x17f   :  { %v975_v19 = vor.u32 %v974_v45, %v973_v4  ;;  %v2898_v11 = vor.u32 %v968_v41, %v967_v7  ;;  %v2900_v35 = vor.u32 %v971_v44, %v970_v28  ;;  %v978_v21 = vor.u32 %v977_v14, %v976_v59 }
 0x180   :  { %v889_v24 = vsel %vm887_vm12, %v888_v30, %v884_v23  ;;  %v760_v42 = vsel %vm639_vm9, %v759_v43, %v758_v63  ;;  %v764_v48 = vsel %vm2857_vm7, 0, %v762_v38  ;;  %v2909_v39 = vor.u32 %v965_v46, %v964_v17 }
 0x181   :  { %v890_v9 = vadd.s32 %v889_v24, %v885_v62  ;;  %v763_v1 = vsel %vm2857_vm7, %v1896_v13, %v760_v42  ;;  %vm979_vm10 = vcmp.lt.s32.totalorder %v2843_v16, 1  ;;  %vm982_vm11 = vcmp.lt.s32.totalorder %v2843_v16, 4 }
 0x182   :  { %v765_v27 = vmul.f32 %v763_v1, %v763_v1  ;;  %vm980_vm13 = vcmp.lt.s32.totalorder %v2843_v16, 2  ;;  %v988_v10 = vsel %vm982_vm11, %v975_v19, 920167782  ;;  %vm981_vm14 = vcmp.lt.s32.totalorder %v2843_v16, 3 }
 0x183   :  { %v891_v58 = vadd.s32 536870912, %v890_v9  ;;  %v991_v6 = vsel %vm979_vm10, %v2898_v11, %v2900_v35  ;;  %v992_v47 = vsel %vm982_vm11, %v978_v21, 1326507024  ;;  %v2923_v3 = vshll.u32 %v955_v8, 8 }
 0x184   :  { %v766_v55 = vmul.f32 -0.001358992, %v765_v27  ;;  %v773_v37 = vmul.f32 -0.00019511016, %v765_v27  ;;  %v993_v49 = vsel %vm981_vm14, %v975_v19, %v992_v47  ;;  %v987_v29 = vsel %vm979_vm10, %v2909_v39, %v2898_v11 }
 0x185   :  { %v2925_v54 = vshrl.u32 %v891_v58, 30  ;;  %v989_v12 = vsel %vm981_vm14, %v2900_v35, %v988_v10  ;;  %v994_v32 = vsel %vm980_vm13, %v991_v6, %v993_v49  ;;  %v781_v18 = vadd.s32 3, %v764_v48 }
 0x186   :  { %v767_v50 = vadd.f32 0.041655596, %v766_v55  ;;  %v774_v40 = vadd.f32 0.008332121, %v773_v37  ;;  %v996_v22 = vand.u32 65535, %v2923_v3  ;;  %v997_v15 = vshrl.u32 %v2923_v3, 16 }
 0x187   :  { %v893_v5 = vshll.u32 %v2925_v54, 30  ;;  %v998_v31 = vand.u32 65535, %v994_v32  ;;  %v999_v60 = vshrl.u32 %v994_v32, 16  ;;  %v990_v62 = vsel %vm980_vm13, %v987_v29, %v989_v12 }
 0x188   :  { %v768_v38 = vmul.f32 %v767_v50, %v765_v27  ;;  %v775_v51 = vmul.f32 %v774_v40, %v765_v27  ;;  %v782_v41 = vand.u32 3, %v781_v18  ;;  %v1020_v7 = vand.u32 65535, %v990_v62 }
 0x189   :  { %v894_v2 = vsub.s32 %v890_v9, %v893_v5  ;;  %v1001_v36 = vmul.u32 %v999_v60, %v996_v22  ;;  %v2943_v25 = vmul.u32 %v998_v31, %v997_v15  ;;  %v1000_v44 = vmul.u32 %v998_v31, %v996_v22 }
 0x18a   :  { %v769_v57 = vadd.f32 -0.4999988, %v768_v38  ;;  %v776_v23 = vadd.f32 -0.16666654, %v775_v51  ;;  %v1021_v28 = vshrl.u32 %v990_v62, 16  ;;  %v1003_v14 = vmul.u32 %v999_v60, %v997_v15 }
 0x18b   :  { %vm895_vm15 = vcmp.lt.s32.totalorder %v894_v2, 0  ;;  %v896_v46 = vsub.s32 0, %v894_v2  ;;  %v1004_v63 = vshll.u32 %v1001_v36, 16  ;;  %v1006_v43 = vshll.u32 %v2943_v25, 16 }
 0x18c   :  { %v770_v4 = vmul.f32 %v769_v57, %v765_v27  ;;  %v777_v45 = vmul.f32 %v776_v23, %v765_v27  ;;  %vm780_vm0 = vweird.f32 %v1896_v13  ;;  %vm783_vm3 = vcmp.lt.s32.totalorder %v782_v41, 2  ;;  %v1498_v57 = vld [vmem:[%s3111_s8 + $0x70] sm:$0xff] }
 0x18d   :  { %v897_v30 = vsel %vm895_vm15, %v896_v46, %v894_v2  ;;  %vm1008_vm2 = vc.u32 %v1000_v44, %v1004_v63  ;;  %v1010_v24 = vadd.s32 %v1004_v63, %v1000_v44  ;;  %vm784_vm4 = vcmp.eq.s32.totalorder %v782_v41, 0  ;;  %1698 = vmatmul.msk.f32.gmra.mxu3 %vm1418_vm1, %v1498_v57 }
 0x18e   :  { %v898_v59 = vclz %v897_v30  ;;  %v771_v8 = vadd.f32 1.0, %v770_v4  ;;  %v778_v17 = vadd.f32 1.0, %v777_v45  ;;  %v1009_v19 = vsel %vm1008_vm2, 1, %v1720_v0 }
 0x18f   :  { %v1011_v9 = vadd.s32 %v1009_v19, %v1003_v14  ;;  %vm1012_vm5 = vc.u32 %v1010_v24, %v1006_v43  ;;  %vm787_vm6 = vcmp.eq.s32.totalorder %v782_v41, 2  ;;  %v1023_v58 = vmul.u32 %v1021_v28, %v996_v22 }
 0x190   :  { %v1665_v21 = vadd.s32 4294967294, %v898_v59  ;;  %v779_v42 = vmul.f32 %v778_v17, %v763_v1  ;;  %v788_v48 = vxor.u32 2147483648, %v771_v8  ;;  %v1013_v27 = vsel %vm1012_vm5, 1, %v1720_v0 }
 0x191   :  { %v886_v6 = vadd.s32 %v2864_v61, %v2838_v53  ;;  %v1024_v55 = vmul.u32 %v1020_v7, %v997_v15  ;;  %v1005_v29 = vshrl.u32 %v1001_v36, 16  ;;  %v1022_v12 = vmul.u32 %v1020_v7, %v996_v22 }
 0x192   :  { %vm1666_vm8 = vcmp.lt.s32.totalorder %v1665_v21, 0  ;;  %v785_v10 = vxor.u32 2147483648, %v779_v42  ;;  %v789_v32 = vsel %vm787_vm6, %v788_v48, %v779_v42  ;;  %v1015_v50 = vadd.s32 %v1013_v27, %v1011_v9 }
 0x193   :  { %v901_v47 = vsel %vm1666_vm8, 0, %v1665_v21  ;;  %v1026_v40 = vshll.u32 %v1023_v58, 16  ;;  %v1025_v53 = vmul.u32 %v1021_v28, %v997_v15  ;;  %v1028_v61 = vshll.u32 %v1024_v55, 16 }
 0x194   :  { %v902_v37 = vsub.s32 32, %v901_v47  ;;  %v906_v49 = vsub.s32 4294967266, %v901_v47  ;;  %v786_v1 = vsel %vm784_vm4, %v771_v8, %v785_v10  ;;  %v903_v5 = vshll.u32 %v894_v2, %v901_v47  ;;  %v1488_v2 = vld [vmem:[%s3111_s8 + $0x20] sm:$0xff] }
 0x195   :  { %v790_v18 = vsel %vm783_vm3, %v786_v1, %v789_v32  ;;  %vm1030_vm7 = vc.u32 %v1022_v12, %v1026_v40  ;;  %v1032_v36 = vadd.s32 %v1026_v40, %v1022_v12  ;;  %v1016_v13 = vadd.s32 %v1015_v50, %v1005_v29  ;;  %1688 = vmatmul.msk.f32.gmra.mxu1 %vm1418_vm1, %v1488_v2 }
 0x196   :  { %v904_v31 = vshrl.u32 %v886_v6, %v902_v37  ;;  %v907_v60 = vadd.s32 127, %v906_v49  ;;  %v791_v38 = vsel %vm780_vm0, nan, %v790_v18  ;;  %v1031_v62 = vsel %vm1030_vm7, 1, %v1720_v0 }
 0x197   :  { %1679 = vmatmul.msk.f32.gmra.mxu0 %vm1418_vm1, %v791_v38  ;;  %v1033_v23 = vadd.s32 %v1031_v62, %v1025_v53  ;;  %v984_v46 = vsel %vm982_vm11, %v2900_v35, 2102212464  ;;  %vm1034_vm9 = vc.u32 %v1032_v36, %v1028_v61  ;;  %v963_v41 = vshrl.u32 %v1724_v33, %v2846_v56 }
 0x198   :  { %v905_v51 = vor.u32 %v904_v31, %v903_v5  ;;  %v908_v22 = vshll.u32 %v907_v60, 23  ;;  %v1007_v44 = vshrl.u32 %v2943_v25, 16  ;;  %v1035_v63 = vsel %vm1034_vm9, 1, %v1720_v0 }
 0x199   :  { %v1027_v45 = vshrl.u32 %v1023_v58, 16  ;;  %v1037_v30 = vadd.s32 %v1035_v63, %v1033_v23  ;;  %v983_v28 = vsel %vm979_vm10, %v963_v41, %v2909_v39  ;;  %v985_v35 = vsel %vm981_vm14, %v2898_v11, %v984_v46 }
 0x19a   :  { %v909_v15 = vor.u32 4788187, %v908_v22  ;;  %v912_v4 = vcvt.s32.f32 %v905_v51  ;;  %v1017_v59 = vadd.s32 %v1016_v13, %v1007_v44  ;;  %v1029_v43 = vshrl.u32 %v1024_v55, 16 }
 0x19b   :  { %v1038_v33 = vadd.s32 %v1037_v30, %v1027_v45  ;;  %v1036_v56 = vadd.s32 %v1032_v36, %v1028_v61  ;;  %v986_v0 = vsel %vm980_vm13, %v983_v28, %v985_v35  ;;  %vm794_vm12 = vcmp.lt.s32.totalorder %v1933_v52, 0  ;;  %v1499_v45 = vld [vmem:[%s3111_s8 + $0x78] sm:$0xff]  ;;  %v1585_v30 = vpop.f32.mrf.mxu2  ;;  %v3009_v28 = vld [vmem:[%s3113_s7] ss:$0 sm:$0xff]  ;;  %v1460_v35 = vpop.f32.mrf.mxu0 }
 0x19c   :  { %v910_v7 = vand.u32 2147483647, %v909_v15  ;;  %vm2983_vm10 = vcmp.le.f32.partialorder %v792_v34, 0.7853982  ;;  %v916_v19 = vsub.s32 4, %v2925_v54  ;;  %v1040_v16 = vmul.u32 %v2923_v3, %v986_v0  ;;  %1699 = vmatmul.msk.f32.gmra.mxu3 %vm1418_vm1, %v1499_v45 }
 0x19d   :  { %v1039_v8 = vadd.s32 %v1038_v33, %v1029_v43  ;;  %vm1042_vm11 = vc.u32 %v1017_v59, %v1036_v56  ;;  %vm935_vm3 = vweird.f32 %v1933_v52  ;;  %v1041_v23 = vadd.s32 %v1036_v56, %v1017_v59  ;;  %v1478_v43 = vpop.f32.mrf.mxu3 }
 0x19e   :  { %v913_v14 = vmul.f32 %v912_v4, %v910_v7  ;;  %v917_v34 = vsel %vm794_vm12, %v916_v19, %v2925_v54  ;;  %v1461_v33 = vadd.f32 %v3009_v28, %v1460_v35  ;;  %v3015_v56 = vadd.f32 %v3009_v28, %v1478_v43 }
 0x19f   :  { %v1043_v17 = vadd.s32 1, %v1039_v8  ;;  %v919_v55 = vsel %vm2983_vm10, 0, %v917_v34  ;;  %vm1631_vm4 = vcmask 261120   ;;  %vm949_vm5 = vcmp.lt.s32.totalorder %v1974_v20, 0 }
 0x1a0   :  { %v914_v25 = vxor.u32 2147483648, %v913_v14  ;;  %v936_v1 = vadd.s32 3, %v919_v55  ;;  %v1621_v39 = vadd.f32 %v1585_v30, %v3015_v56  ;;  %vm3029_vm6 = vcmp.le.f32.partialorder %v947_v26, 0.7853982 }
 0x1a1   :  { %v1044_v42 = vsel %vm1042_vm11, %v1043_v17, %v1039_v8 }
 0x1a2   :  { %v915_v11 = vsel %vm794_vm12, %v914_v25, %v913_v14  ;;  %v1045_v48 = vadd.s32 %v1044_v42, %v1040_v16  ;;  %v937_v31 = vand.u32 3, %v936_v1  ;;  %v1567_v14 = vpop.f32.mrf.mxu1  ;;  %1638 = vst.msk [vmem:[%s3114_s9 + $0x30] sm:$0xff] %vm1631_vm4, %v1621_v39  ;;  %vm1090_vm12 = vweird.f32 %v1974_v20 }
 0x1a3   :  { %v918_v24 = vsel %vm2983_vm10, %v1933_v52, %v915_v11  ;;  %v1489_v52 = vld [vmem:[%s3111_s8 + $0x28] sm:$0xff]  ;;  %v1615_v8 = vadd.f32 %v1567_v14, %v1461_v33  ;;  %v1588_v19 = vpop.f32.mrf.mxu2 }
 0x1a4   :  { %v920_v21 = vmul.f32 %v918_v24, %v918_v24  ;;  %v1046_v58 = vadd.s32 536870912, %v1045_v48  ;;  %vm939_vm14 = vcmp.eq.s32.totalorder %v937_v31, 0  ;;  %vm942_vm15 = vcmp.eq.s32.totalorder %v937_v31, 2  ;;  %1689 = vmatmul.msk.f32.gmra.mxu1 %vm1418_vm1, %v1489_v52 }
 0x1a5   :  { %vm938_vm2 = vcmp.lt.s32.totalorder %v937_v31, 2  ;;  %1632 = vst.msk [vmem:[%s3114_s9] sm:$0xff] %vm1631_vm4, %v1615_v8 }
 0x1a6   :  { %v921_v9 = vmul.f32 -0.001358992, %v920_v21  ;;  %v928_v27 = vmul.f32 -0.00019511016, %v920_v21  ;;  %v2993_v47 = vshrl.u32 %v1046_v58, 30 }
 0x1a8   :  { %v922_v10 = vadd.f32 0.041655596, %v921_v9  ;;  %v929_v6 = vadd.f32 0.008332121, %v928_v27  ;;  %v1048_v29 = vshll.u32 %v2993_v47, 30  ;;  %v1071_v9 = vsub.s32 4, %v2993_v47 }
 0x1aa   :  { %v923_v37 = vmul.f32 %v922_v10, %v920_v21  ;;  %v930_v49 = vmul.f32 %v929_v6, %v920_v21  ;;  %v1049_v32 = vsub.s32 %v1045_v48, %v1048_v29  ;;  %v1570_v48 = vpop.f32.mrf.mxu1  ;;  %v1072_v26 = vsel %vm949_vm5, %v1071_v9, %v2993_v47 }
 0x1ab   :  { %v1074_v29 = vsel %vm3029_vm6, 0, %v1072_v26 }
 0x1ac   :  { %v924_v3 = vadd.f32 -0.4999988, %v923_v37  ;;  %v931_v12 = vadd.f32 -0.16666654, %v930_v49  ;;  %vm1050_vm13 = vcmp.lt.s32.totalorder %v1049_v32, 0  ;;  %v1051_v54 = vsub.s32 0, %v1049_v32  ;;  %v1591_v49 = vpop.f32.mrf.mxu2 }
 0x1ad   :  { %v1623_v1 = vadd.f32 %v1591_v49, %v1461_v33 }
 0x1ae   :  { %v925_v50 = vmul.f32 %v924_v3, %v920_v21  ;;  %v932_v40 = vmul.f32 %v931_v12, %v920_v21  ;;  %v1052_v60 = vsel %vm1050_vm13, %v1051_v54, %v1049_v32 }
 0x1af   :  { %v1053_v61 = vclz %v1052_v60  ;;  %1640 = vst.msk [vmem:[%s3114_s9 + $0x40] sm:$0xff] %vm1631_vm4, %v1623_v1 }
 0x1b0   :  { %v926_v18 = vadd.f32 1.0, %v925_v50  ;;  %v933_v5 = vadd.f32 1.0, %v932_v40  ;;  %v1091_v40 = vadd.s32 3, %v1074_v29 }
 0x1b1   :  { %v1668_v22 = vadd.s32 4294967294, %v1053_v61 }
 0x1b2   :  { %v934_v38 = vmul.f32 %v933_v5, %v918_v24  ;;  %v943_v53 = vxor.u32 2147483648, %v926_v18  ;;  %v1463_v24 = vpop.f32.mrf.mxu0  ;;  %v1092_v31 = vand.u32 3, %v1091_v40 }
 0x1b3   :  { %vm1669_vm0 = vcmp.lt.s32.totalorder %v1668_v22, 0  ;;  %v1464_v42 = vadd.f32 %v3009_v28, %v1463_v24 }
 0x1b4   :  { %v940_v51 = vxor.u32 2147483648, %v934_v38  ;;  %v944_v36 = vsel %vm942_vm15, %v943_v53, %v934_v38  ;;  %v1056_v2 = vsel %vm1669_vm0, 0, %v1668_v22  ;;  %v1594_v60 = vpop.f32.mrf.mxu2  ;;  %vm1094_vm8 = vcmp.eq.s32.totalorder %v1092_v31, 0 }
 0x1b5   :  { %v1057_v15 = vsub.s32 32, %v1056_v2  ;;  %v1061_v46 = vsub.s32 4294967266, %v1056_v2  ;;  %v1058_v41 = vshll.u32 %v1049_v32, %v1056_v2  ;;  %v1616_v58 = vadd.f32 %v1570_v48, %v1464_v42 }
 0x1b6   :  { %v941_v62 = vsel %vm939_vm14, %v926_v18, %v940_v51  ;;  %v1624_v61 = vadd.f32 %v1594_v60, %v1464_v42  ;;  %vm1097_vm7 = vcmp.eq.s32.totalorder %v1092_v31, 2  ;;  %vm1093_vm9 = vcmp.lt.s32.totalorder %v1092_v31, 2 }
 0x1b7   :  { %v945_v57 = vsel %vm938_vm2, %v941_v62, %v944_v36  ;;  %v1059_v44 = vshrl.u32 %v1041_v23, %v1057_v15  ;;  %v1062_v63 = vadd.s32 127, %v1061_v46  ;;  %1633 = vst.msk [vmem:[%s3114_s9 + $0x8] sm:$0xff] %vm1631_vm4, %v1616_v58 }
 0x1b8   :  { %v946_v13 = vsel %vm935_vm3, nan, %v945_v57  ;;  %1641 = vst.msk [vmem:[%s3114_s9 + $0x48] sm:$0xff] %vm1631_vm4, %v1624_v61 }
 0x1b9   :  { %1680 = vmatmul.msk.f32.gmra.mxu0 %vm1418_vm1, %v946_v13  ;;  %v1060_v7 = vor.u32 %v1059_v44, %v1058_v41  ;;  %v1063_v4 = vshll.u32 %v1062_v63, 23 }
 0x1bb   :  { %v1064_v59 = vor.u32 4788187, %v1063_v4  ;;  %v1067_v0 = vcvt.s32.f32 %v1060_v7 }
 0x1bc   :  { %v1597_v41 = vpop.f32.mrf.mxu2 }
 0x1bd   :  { %v1065_v25 = vand.u32 2147483647, %v1064_v59 }
 0x1bf   :  { %v1068_v11 = vmul.f32 %v1067_v0, %v1065_v25 }
 0x1c1   :  { %v1069_v17 = vxor.u32 2147483648, %v1068_v11 }
 0x1c3   :  { %v1070_v21 = vsel %vm949_vm5, %v1069_v17, %v1068_v11 }
 0x1c4   :  { %v1073_v27 = vsel %vm3029_vm6, %v1974_v20, %v1070_v21 }
 0x1c5   :  { %v1075_v34 = vmul.f32 %v1073_v27, %v1073_v27 }
 0x1c7   :  { %v1076_v10 = vmul.f32 -0.001358992, %v1075_v34  ;;  %v1083_v6 = vmul.f32 -0.00019511016, %v1075_v34  ;;  %v1573_v15 = vpop.f32.mrf.mxu1 }
 0x1c9   :  { %v1077_v55 = vadd.f32 0.041655596, %v1076_v10  ;;  %v1084_v37 = vadd.f32 0.008332121, %v1083_v6 }
 0x1cb   :  { %v1078_v3 = vmul.f32 %v1077_v55, %v1075_v34  ;;  %v1085_v12 = vmul.f32 %v1084_v37, %v1075_v34  ;;  %v1600_v30 = vpop.f32.mrf.mxu2 }
 0x1cd   :  { %v1079_v32 = vadd.f32 -0.4999988, %v1078_v3  ;;  %v1086_v50 = vadd.f32 -0.16666654, %v1085_v12 }
 0x1cf   :  { %v1080_v54 = vmul.f32 %v1079_v32, %v1075_v34  ;;  %v1087_v18 = vmul.f32 %v1086_v50, %v1075_v34 }
 0x1d1   :  { %v1081_v47 = vadd.f32 1.0, %v1080_v54  ;;  %v1088_v5 = vadd.f32 1.0, %v1087_v18 }
 0x1d3   :  { %v1089_v38 = vmul.f32 %v1088_v5, %v1073_v27  ;;  %v1098_v53 = vxor.u32 2147483648, %v1081_v47 }
 0x1d4   :  { %v1481_v51 = vpop.f32.mrf.mxu3 }
 0x1d5   :  { %v1482_v22 = vadd.f32 %v3009_v28, %v1481_v51  ;;  %v1095_v62 = vxor.u32 2147483648, %v1089_v38  ;;  %v1099_v2 = vsel %vm1097_vm7, %v1098_v53, %v1089_v38 }
 0x1d7   :  { %v1622_v36 = vadd.f32 %v1588_v19, %v1482_v22  ;;  %v1096_v57 = vsel %vm1094_vm8, %v1081_v47, %v1095_v62 }
 0x1d8   :  { %v1100_v13 = vsel %vm1093_vm9, %v1096_v57, %v1099_v2 }
 0x1d9   :  { %1639 = vst.msk [vmem:[%s3114_s9 + $0x38] sm:$0xff] %vm1631_vm4, %v1622_v36  ;;  %v1101_v23 = vsel %vm1090_vm12, nan, %v1100_v13 }
 0x1da   :  { %1681 = vmatmul.msk.f32.gmra.mxu0 %vm1418_vm1, %v1101_v23 }
 0x1dc   :  { %v1603_v20 = vpop.f32.mrf.mxu3 }
 0x1ee   :  { %v1576_v45 = vpop.f32.mrf.mxu1 }
 0x1f0   :  { %v1466_v46 = vpop.f32.mrf.mxu0 }
 0x1f1   :  { %v1467_v44 = vadd.f32 %v3009_v28, %v1466_v46 }
 0x1f3   :  { %v1617_v63 = vadd.f32 %v1573_v15, %v1467_v44  ;;  %v1625_v7 = vadd.f32 %v1597_v41, %v1467_v44  ;;  %v1606_v4 = vpop.f32.mrf.mxu3 }
 0x1f5   :  { %1634 = vst.msk [vmem:[%s3114_s9 + $0x10] sm:$0xff] %vm1631_vm4, %v1617_v63 }
 0x1f6   :  { %1642 = vst.msk [vmem:[%s3114_s9 + $0x50] sm:$0xff] %vm1631_vm4, %v1625_v7 }
 0x210   :  { %v1609_v43 = vpop.f32.mrf.mxu3 }
 0x211   :  { %v1629_v33 = vadd.f32 %v1609_v43, %v3015_v56 }
 0x212   :  { %v1579_v0 = vpop.f32.mrf.mxu1 }
 0x213   :  { %1646 = vst.msk [vmem:[%s3114_s9 + $0x70] sm:$0xff] %vm1631_vm4, %v1629_v33 }
 0x214   :  { %v1469_v52 = vpop.f32.mrf.mxu0 }
 0x215   :  { %v1470_v35 = vadd.f32 %v3009_v28, %v1469_v52 }
 0x217   :  { %v1618_v59 = vadd.f32 %v1576_v45, %v1470_v35  ;;  %v1626_v14 = vadd.f32 %v1600_v30, %v1470_v35 }
 0x219   :  { %1635 = vst.msk [vmem:[%s3114_s9 + $0x18] sm:$0xff] %vm1631_vm4, %v1618_v59 }
 0x21a   :  { %1643 = vst.msk [vmem:[%s3114_s9 + $0x58] sm:$0xff] %vm1631_vm4, %v1626_v14 }
 0x21f   :  { %v1612_v56 = vpop.f32.mrf.mxu3 }
 0x220   :  { %v1630_v17 = vadd.f32 %v1612_v56, %v1482_v22 }
 0x221   :  { %v1582_v24 = vpop.f32.mrf.mxu1 }
 0x222   :  { %1647 = vst.msk [vmem:[%s3114_s9 + $0x78] sm:$0xff] %vm1631_vm4, %v1630_v17 }
 0x236   :  { %v1472_v25 = vpop.f32.mrf.mxu0 }
 0x237   :  { %v1473_v8 = vadd.f32 %v3009_v28, %v1472_v25 }
 0x239   :  { %v1627_v39 = vadd.f32 %v1603_v20, %v1473_v8  ;;  %v1619_v11 = vadd.f32 %v1579_v0, %v1473_v8 }
 0x23b   :  { %1644 = vst.msk [vmem:[%s3114_s9 + $0x60] sm:$0xff] %vm1631_vm4, %v1627_v39 }
 0x23c   :  { %1636 = vst.msk [vmem:[%s3114_s9 + $0x20] sm:$0xff] %vm1631_vm4, %v1619_v11 }
 0x257   :  { %v1475_v19 = vpop.f32.mrf.mxu0 }
 0x258   :  { %v1476_v16 = vadd.f32 %v3009_v28, %v1475_v19 }
 0x25a   :  { %v1628_v21 = vadd.f32 %v1606_v4, %v1476_v16  ;;  %v1620_v42 = vadd.f32 %v1582_v24, %v1476_v16 }
 0x25c   :  { %1645 = vst.msk [vmem:[%s3114_s9 + $0x68] sm:$0xff] %vm1631_vm4, %v1628_v21 }
 0x25d   :  { %1637 = vst.msk [vmem:[%s3114_s9 + $0x28] sm:$0xff] %vm1631_vm4, %v1620_v42 }

</bundles_post_ra>
